<compile_context>
chip_gen: v7x
topology: tpu7x:2x2x1
jax: 0.10.0
libtpu: 0.0.40
codegen_flags: <defaults>
</compile_context>

<pallas_src>
import jax
import jax.numpy as jnp
from jax.experimental import pallas as pl
from jax.experimental.pallas import tpu as pltpu

# ---- small config consistent with the module's structure ----
VOCAB_SIZE = 65          # e.g. tiny-shakespeare char vocab
VOCAB_PAD = 128          # lm_head output padded to a full lane width
N_EMBD = 64              # scaled-down n_embd
N_HEAD = 4               # scaled-down n_head
HEAD_SIZE = N_EMBD // N_HEAD
N_LAYER = 2              # scaled-down n_layer
BLOCK_SIZE = 16          # scaled-down block_size (max T); must be a multiple of 8
LN_EPS = 1e-5            # torch.nn.LayerNorm default eps


def _layernorm(x, g, b):
    mu = jnp.mean(x, axis=-1, keepdims=True)
    xc = x - mu
    var = jnp.mean(xc * xc, axis=-1, keepdims=True)
    return xc * jax.lax.rsqrt(var + LN_EPS) * g + b


def _gpt_fused_kernel(x_ref, bias_ref,
                      ln1g_ref, ln1b_ref, wqkv_ref, wproj_ref, bproj_ref,
                      ln2g_ref, ln2b_ref, w1_ref, b1_ref, w2_ref, b2_ref,
                      lnfg_ref, lnfb_ref, lmw_ref, o_ref):
    """One batch element per grid step: N_LAYER blocks + final LN + lm_head.

    x_ref:    (T, C) f32 activations (token + positional embedding).
    bias_ref: (T, T) f32 additive causal mask (0 on/below diagonal, -1e30 above).
    Per-layer weights are stacked on a leading N_LAYER dim; matmul weights are
    bf16, LayerNorm / bias params are f32.  Output o_ref: (T, VOCAB_PAD) f32.
    """
    T = x_ref.shape[0]
    C = x_ref.shape[1]
    H, HS = N_HEAD, HEAD_SIZE

    x = x_ref[...]                      # (T, C) f32
    bias = bias_ref[...]                # (T, T) f32, broadcasts over heads

    for l in range(N_LAYER):            # static layer loop (unrolled)
        # ---- multi-head causal self-attention on LN1(x) ----
        xn = _layernorm(x, ln1g_ref[l], ln1b_ref[l])                # (T, C) f32
        xn_b = xn.astype(jnp.bfloat16)                              # single cast
        # Fused per-head QKV projection: one batched matmul, batch dim = 3*H.
        xn_bc = jnp.broadcast_to(xn_b[None, :, :], (3 * H, T, C))   # (3H, T, C)
        qkv = jax.lax.dot_general(
            xn_bc, wqkv_ref[l],
            dimension_numbers=(((2,), (1,)), ((0,), (0,))),
            preferred_element_type=jnp.float32)                     # (3H, T, HS)
        q = qkv[:H]                      # (H, T, HS); scale folded into weights
        k = qkv[H:2 * H]
        v = qkv[2 * H:]

        # scores[h, i, j] = q[h, i, :] . k[h, j, :]
        s = jax.lax.dot_general(
            q.astype(jnp.bfloat16), k.astype(jnp.bfloat16),
            dimension_numbers=(((2,), (2,)), ((0,), (0,))),
            preferred_element_type=jnp.float32)                     # (H, T, T)
        s = s + bias                                                # additive mask

        # explicit softmax; reciprocal goes to the EUP slot.
        m = jnp.max(s, axis=-1, keepdims=True)
        p = jnp.exp(s - m)
        denom = jnp.sum(p, axis=-1, keepdims=True)
        p = p * pl.reciprocal(denom, approx=True)
        # TODO(synk): nn.Dropout is identity in eval mode; omitted.

        o = jax.lax.dot_general(
            p.astype(jnp.bfloat16), v.astype(jnp.bfloat16),
            dimension_numbers=(((2,), (1,)), ((0,), (0,))),
            preferred_element_type=jnp.float32)                     # (H, T, HS)

        # Per-head output projection + sum over heads (== proj of concat(heads)).
        sa_h = jax.lax.dot_general(
            o.astype(jnp.bfloat16), wproj_ref[l],
            dimension_numbers=(((2,), (1,)), ((0,), (0,))),
            preferred_element_type=jnp.float32)                     # (H, T, C)
        sa = jnp.sum(sa_h, axis=0) + bproj_ref[l]                   # (T, C)
        x = x + sa                                                  # residual 1

        # ---- feed-forward on LN2(x) ----
        xn2 = _layernorm(x, ln2g_ref[l], ln2b_ref[l])
        hdn = jnp.maximum(
            jnp.dot(xn2.astype(jnp.bfloat16), w1_ref[l],
                    preferred_element_type=jnp.float32) + b1_ref[l],
            0.0)                                                    # (T, 4C)
        ff = jnp.dot(hdn.astype(jnp.bfloat16), w2_ref[l],
                     preferred_element_type=jnp.float32) + b2_ref[l]
        x = x + ff                                                  # residual 2

    # ---- final LayerNorm + lm_head (padded to 128 lanes, zero bias dropped) ----
    xn_f = _layernorm(x, lnfg_ref[...], lnfb_ref[...])
    o_ref[...] = jnp.dot(xn_f.astype(jnp.bfloat16), lmw_ref[...],
                         preferred_element_type=jnp.float32)


def gpt_forward(idx, params):
    """Equivalent of GPTLanguageModel.forward(idx) -> logits (targets=None path)."""
    B, T = idx.shape
    C = N_EMBD
    assert T % 8 == 0, "sequence length must be a multiple of 8 for the row blocks"
    # TODO(synk): token-embedding gather stays in XLA (could use scalar prefetch
    # + pl.Element row gather if it ever matters at scale).
    tok_emb = params['tok_table'][idx]                              # (B, T, C)
    pos_emb = params['pos_table'][:T]                               # (T, C)
    x = (tok_emb + pos_emb[None, :, :]).astype(jnp.float32).reshape(B * T, C)

    # Additive causal mask bias, built once outside the kernel.
    row = jnp.arange(T, dtype=jnp.int32)[:, None]
    col = jnp.arange(T, dtype=jnp.int32)[None, :]
    mask_bias = jnp.where(col <= row, 0.0, -1e30).astype(jnp.float32)  # (T, T)

    weights = [params['ln1_g'], params['ln1_b'],
               params['wqkv'], params['wproj'], params['bproj'],
               params['ln2_g'], params['ln2_b'],
               params['w1'], params['b1'], params['w2'], params['b2'],
               params['lnf_g'], params['lnf_b'], params['lm_w']]

    def _resident(arr):
        # Full-array VMEM-resident block; constant index map => fetched once.
        rank = arr.ndim
        return pl.BlockSpec(arr.shape, lambda b, rank=rank: (0,) * rank)

    in_specs = ([pl.BlockSpec((T, C), lambda b: (b, 0)),      # activations, per batch
                 pl.BlockSpec((T, T), lambda b: (0, 0))]      # causal bias, shared
                + [_resident(w) for w in weights])
    out_specs = pl.BlockSpec((T, VOCAB_PAD), lambda b: (b, 0))

    out = pl.pallas_call(
        _gpt_fused_kernel,
        out_shape=jax.ShapeDtypeStruct((B * T, VOCAB_PAD), jnp.float32),
        grid=(B,),
        in_specs=in_specs,
        out_specs=out_specs,
        compiler_params=pltpu.CompilerParams(
            dimension_semantics=("parallel",),       # split batch over v7x's 2 TCs
            vmem_limit_bytes=32 * 1024 * 1024),
    )(x, mask_bias, *weights)

    return out.reshape(B, T, VOCAB_PAD)[:, :, :VOCAB_SIZE]


def init_params(key):
    """Deterministic init mirroring _init_weights: N(0, 0.02) weights, zero biases.

    Attention weights are pre-arranged for the kernel:
      wqkv : (L, 3*H, C, HS) bf16, [q heads | k heads | v heads] stacked on the
             leading dim, with head_size**-0.5 folded into the q columns.
      wproj: (L, H, HS, C)  bf16, per-head slices of the (C, C) output proj.
    """
    C, H, HS, V, L = N_EMBD, N_HEAD, HEAD_SIZE, VOCAB_SIZE, N_LAYER

    def nrm(k, shape):
        return (0.02 * jax.random.normal(k, shape)).astype(jnp.float32)

    keys = iter(jax.random.split(key, 2 + L * 6 + 1))

    params = {
        'tok_table': nrm(next(keys), (V, C)),
        'pos_table': nrm(next(keys), (BLOCK_SIZE, C)),
    }

    def to_heads(w):  # (C, C) with heads concat on out dim -> (H, C, HS)
        return w.reshape(C, H, HS).transpose(1, 0, 2)

    wqkv_l, wproj_l, w1_l, w2_l = [], [], [], []
    for _ in range(L):
        wq = nrm(next(keys), (C, C)) * (HS ** -0.5)        # fold 1/sqrt(hs) into q
        wk = nrm(next(keys), (C, C))
        wv = nrm(next(keys), (C, C))
        wqkv_l.append(jnp.concatenate(
            [to_heads(wq), to_heads(wk), to_heads(wv)], axis=0))   # (3H, C, HS)
        wproj_l.append(nrm(next(keys), (C, C)).reshape(H, HS, C))  # (H, HS, C)
        w1_l.append(nrm(next(keys), (C, 4 * C)))
        w2_l.append(nrm(next(keys), (4 * C, C)))

    params.update({
        'ln1_g': jnp.ones((L, 1, C), jnp.float32),
        'ln1_b': jnp.zeros((L, 1, C), jnp.float32),
        'wqkv': jnp.stack(wqkv_l).astype(jnp.bfloat16),    # (L, 3H, C, HS)
        'wproj': jnp.stack(wproj_l).astype(jnp.bfloat16),  # (L, H, HS, C)
        'bproj': jnp.zeros((L, 1, C), jnp.float32),
        'ln2_g': jnp.ones((L, 1, C), jnp.float32),
        'ln2_b': jnp.zeros((L, 1, C), jnp.float32),
        'w1': jnp.stack(w1_l).astype(jnp.bfloat16),
        'b1': jnp.zeros((L, 1, 4 * C), jnp.float32),
        'w2': jnp.stack(w2_l).astype(jnp.bfloat16),
        'b2': jnp.zeros((L, 1, C), jnp.float32),
        'lnf_g': jnp.ones((1, C), jnp.float32),
        'lnf_b': jnp.zeros((1, C), jnp.float32),
    })

    # lm_head padded to 128 output lanes with zero columns (sliced off in wrapper).
    lm_w = nrm(next(keys), (C, V))
    params['lm_w'] = (jnp.zeros((C, VOCAB_PAD), jnp.float32)
                      .at[:, :V].set(lm_w).astype(jnp.bfloat16))
    # NOTE: lm_head bias is zero-initialized by _init_weights, so the dead
    # (T, 128) broadcast-add is dropped from the kernel (perf review item).
    return params


if __name__ == "__main__":
    key = jax.random.PRNGKey(0)
    k_params, k_idx = jax.random.split(key)
    params = init_params(k_params)

    B, T = 2, BLOCK_SIZE
    idx = jax.random.randint(k_idx, (B, T), 0, VOCAB_SIZE, dtype=jnp.int32)

    logits = gpt_forward(idx, params)
    logits = jax.block_until_ready(logits)

    assert logits.shape == (B, T, VOCAB_SIZE), logits.shape
    assert bool(jnp.all(jnp.isfinite(logits)))
    print("KERNEL_OK")
</pallas_src>

<mosaic_0001>
module attributes {stable_mosaic.version = 11 : i64} {
  func.func @_gpt_fused_kernel(%arg0: i32, %arg1: memref<16x64xf32, #tpu.memory_space<vmem>>, %arg2: memref<16x16xf32, #tpu.memory_space<vmem>>, %arg3: memref<2x1x64xf32, #tpu.memory_space<vmem>>, %arg4: memref<2x1x64xf32, #tpu.memory_space<vmem>>, %arg5: memref<2x12x64x16xbf16, #tpu.memory_space<vmem>>, %arg6: memref<2x4x16x64xbf16, #tpu.memory_space<vmem>>, %arg7: memref<2x1x64xf32, #tpu.memory_space<vmem>>, %arg8: memref<2x1x64xf32, #tpu.memory_space<vmem>>, %arg9: memref<2x1x64xf32, #tpu.memory_space<vmem>>, %arg10: memref<2x64x256xbf16, #tpu.memory_space<vmem>>, %arg11: memref<2x1x256xf32, #tpu.memory_space<vmem>>, %arg12: memref<2x256x64xbf16, #tpu.memory_space<vmem>>, %arg13: memref<2x1x64xf32, #tpu.memory_space<vmem>>, %arg14: memref<1x64xf32, #tpu.memory_space<vmem>>, %arg15: memref<1x64xf32, #tpu.memory_space<vmem>>, %arg16: memref<64x128xbf16, #tpu.memory_space<vmem>>, %arg17: memref<16x128xf32, #tpu.memory_space<vmem>>) attributes {dimension_semantics = [#tpu.dimension_semantics<parallel>], iteration_bounds = array<i64: 2>, scalar_prefetch = 0 : i64, scratch_operands = 0 : i64, tpu.core_type = #tpu.core_type<tc>, window_params = [{transform_indices = @transform_0, window_bounds = array<i64: 16, 64>}, {pipeline_mode = #tpu.pipeline_mode<synchronous>, transform_indices = @transform_1, window_bounds = array<i64: 16, 16>}, {pipeline_mode = #tpu.pipeline_mode<synchronous>, transform_indices = @transform_2, window_bounds = array<i64: 2, 1, 64>}, {pipeline_mode = #tpu.pipeline_mode<synchronous>, transform_indices = @transform_3, window_bounds = array<i64: 2, 1, 64>}, {pipeline_mode = #tpu.pipeline_mode<synchronous>, transform_indices = @transform_4, window_bounds = array<i64: 2, 12, 64, 16>}, {pipeline_mode = #tpu.pipeline_mode<synchronous>, transform_indices = @transform_5, window_bounds = array<i64: 2, 4, 16, 64>}, {pipeline_mode = #tpu.pipeline_mode<synchronous>, transform_indices = @transform_6, window_bounds = array<i64: 2, 1, 64>}, {pipeline_mode = #tpu.pipeline_mode<synchronous>, transform_indices = @transform_7, window_bounds = array<i64: 2, 1, 64>}, {pipeline_mode = #tpu.pipeline_mode<synchronous>, transform_indices = @transform_8, window_bounds = array<i64: 2, 1, 64>}, {pipeline_mode = #tpu.pipeline_mode<synchronous>, transform_indices = @transform_9, window_bounds = array<i64: 2, 64, 256>}, {pipeline_mode = #tpu.pipeline_mode<synchronous>, transform_indices = @transform_10, window_bounds = array<i64: 2, 1, 256>}, {pipeline_mode = #tpu.pipeline_mode<synchronous>, transform_indices = @transform_11, window_bounds = array<i64: 2, 256, 64>}, {pipeline_mode = #tpu.pipeline_mode<synchronous>, transform_indices = @transform_12, window_bounds = array<i64: 2, 1, 64>}, {pipeline_mode = #tpu.pipeline_mode<synchronous>, transform_indices = @transform_13, window_bounds = array<i64: 1, 64>}, {pipeline_mode = #tpu.pipeline_mode<synchronous>, transform_indices = @transform_14, window_bounds = array<i64: 1, 64>}, {pipeline_mode = #tpu.pipeline_mode<synchronous>, transform_indices = @transform_15, window_bounds = array<i64: 64, 128>}, {transform_indices = @transform_16, window_bounds = array<i64: 16, 128>}]} {
    %c0 = arith.constant 0 : index
    %c0_0 = arith.constant 0 : index
    %0 = vector.load %arg1[%c0, %c0_0] : memref<16x64xf32, #tpu.memory_space<vmem>>, vector<16x64xf32>
    %c0_1 = arith.constant 0 : index
    %c0_2 = arith.constant 0 : index
    %1 = vector.load %arg2[%c0_1, %c0_2] : memref<16x16xf32, #tpu.memory_space<vmem>>, vector<16x16xf32>
    %c0_3 = arith.constant 0 : index
    %c0_4 = arith.constant 0 : index
    %c0_5 = arith.constant 0 : index
    %2 = vector.load %arg3[%c0_3, %c0_4, %c0_5] : memref<2x1x64xf32, #tpu.memory_space<vmem>>, vector<1x1x64xf32>
    %3 = vector.shape_cast %2 : vector<1x1x64xf32> to vector<1x64xf32>
    %c0_6 = arith.constant 0 : index
    %c0_7 = arith.constant 0 : index
    %c0_8 = arith.constant 0 : index
    %4 = vector.load %arg4[%c0_6, %c0_7, %c0_8] : memref<2x1x64xf32, #tpu.memory_space<vmem>>, vector<1x1x64xf32>
    %5 = vector.shape_cast %4 : vector<1x1x64xf32> to vector<1x64xf32>
    %cst = arith.constant dense<0.000000e+00> : vector<16xf32>
    %6 = vector.multi_reduction <add>, %0, %cst [1] : vector<16x64xf32> to vector<16xf32>
    %7 = vector.shape_cast %6 : vector<16xf32> to vector<16x1xf32>
    %cst_9 = arith.constant 6.400000e+01 : f32
    %8 = vector.broadcast %cst_9 : f32 to vector<16x1xf32>
    %9 = arith.divf %7, %8 : vector<16x1xf32>
    %10 = vector.broadcast %9 : vector<16x1xf32> to vector<16x64xf32>
    %11 = arith.subf %0, %10 : vector<16x64xf32>
    %12 = arith.mulf %11, %11 : vector<16x64xf32>
    %cst_10 = arith.constant dense<0.000000e+00> : vector<16xf32>
    %13 = vector.multi_reduction <add>, %12, %cst_10 [1] : vector<16x64xf32> to vector<16xf32>
    %14 = vector.shape_cast %13 : vector<16xf32> to vector<16x1xf32>
    %cst_11 = arith.constant 6.400000e+01 : f32
    %15 = vector.broadcast %cst_11 : f32 to vector<16x1xf32>
    %16 = arith.divf %14, %15 : vector<16x1xf32>
    %cst_12 = arith.constant 9.99999974E-6 : f32
    %17 = vector.broadcast %cst_12 : f32 to vector<16x1xf32>
    %18 = arith.addf %16, %17 : vector<16x1xf32>
    %19 = math.rsqrt %18 : vector<16x1xf32>
    %20 = vector.broadcast %19 : vector<16x1xf32> to vector<16x64xf32>
    %21 = arith.mulf %11, %20 : vector<16x64xf32>
    %22 = vector.broadcast %3 : vector<1x64xf32> to vector<16x64xf32>
    %23 = arith.mulf %21, %22 : vector<16x64xf32>
    %24 = vector.broadcast %5 : vector<1x64xf32> to vector<16x64xf32>
    %25 = arith.addf %23, %24 : vector<16x64xf32>
    %26 = arith.truncf %25 : vector<16x64xf32> to vector<16x64xbf16>
    %27 = vector.shape_cast %26 : vector<16x64xbf16> to vector<1x16x64xbf16>
    %28 = vector.shape_cast %27 : vector<1x16x64xbf16> to vector<1x16x64xbf16>
    %29 = vector.broadcast %28 : vector<1x16x64xbf16> to vector<12x16x64xbf16>
    %c0_13 = arith.constant 0 : index
    %c0_14 = arith.constant 0 : index
    %c0_15 = arith.constant 0 : index
    %c0_16 = arith.constant 0 : index
    %30 = vector.load %arg5[%c0_13, %c0_14, %c0_15, %c0_16] : memref<2x12x64x16xbf16, #tpu.memory_space<vmem>>, vector<1x12x64x16xbf16>
    %31 = vector.shape_cast %30 : vector<1x12x64x16xbf16> to vector<12x64x16xbf16>
    %cst_17 = arith.constant dense<0.000000e+00> : vector<12x16x16xf32>
    %32 = tpu.matmul %29, %31, %cst_17 {dimension_numbers = #tpu.dot_dimension_numbers<[2], [1], [1], [2], [0, 0, 0, 1, 1, 2], [0], [0]>} : vector<12x16x64xbf16>, vector<12x64x16xbf16>, vector<12x16x16xf32> -> vector<12x16x16xf32>
    %33 = vector.extract_strided_slice %32 {offsets = [0, 0, 0], sizes = [4, 16, 16], strides = [1, 1, 1]} : vector<12x16x16xf32> to vector<4x16x16xf32>
    %34 = vector.extract_strided_slice %32 {offsets = [4, 0, 0], sizes = [4, 16, 16], strides = [1, 1, 1]} : vector<12x16x16xf32> to vector<4x16x16xf32>
    %35 = vector.extract_strided_slice %32 {offsets = [8, 0, 0], sizes = [4, 16, 16], strides = [1, 1, 1]} : vector<12x16x16xf32> to vector<4x16x16xf32>
    %36 = arith.truncf %33 : vector<4x16x16xf32> to vector<4x16x16xbf16>
    %37 = arith.truncf %34 : vector<4x16x16xf32> to vector<4x16x16xbf16>
    %cst_18 = arith.constant dense<0.000000e+00> : vector<4x16x16xf32>
    %38 = tpu.matmul %36, %37, %cst_18 {dimension_numbers = #tpu.dot_dimension_numbers<[2], [2], [1], [1], [0, 0, 0, 1, 1, 1], [0], [0]>} : vector<4x16x16xbf16>, vector<4x16x16xbf16>, vector<4x16x16xf32> -> vector<4x16x16xf32>
    %39 = vector.shape_cast %1 : vector<16x16xf32> to vector<1x16x16xf32>
    %40 = vector.broadcast %39 : vector<1x16x16xf32> to vector<4x16x16xf32>
    %41 = arith.addf %38, %40 : vector<4x16x16xf32>
    %cst_19 = arith.constant dense<0xFF800000> : vector<4x16xf32>
    %42 = vector.multi_reduction <maximumf>, %41, %cst_19 [2] : vector<4x16x16xf32> to vector<4x16xf32>
    %43 = vector.shape_cast %42 : vector<4x16xf32> to vector<4x16x1xf32>
    %44 = vector.broadcast %43 : vector<4x16x1xf32> to vector<4x16x16xf32>
    %45 = arith.subf %41, %44 : vector<4x16x16xf32>
    %46 = math.exp %45 : vector<4x16x16xf32>
    %cst_20 = arith.constant dense<0.000000e+00> : vector<4x16xf32>
    %47 = vector.multi_reduction <add>, %46, %cst_20 [2] : vector<4x16x16xf32> to vector<4x16xf32>
    %48 = vector.shape_cast %47 : vector<4x16xf32> to vector<4x16x1xf32>
    %49 = tpu.reciprocal %48 {approx = true} : vector<4x16x1xf32> -> vector<4x16x1xf32>
    %50 = vector.broadcast %49 : vector<4x16x1xf32> to vector<4x16x16xf32>
    %51 = arith.mulf %46, %50 : vector<4x16x16xf32>
    %52 = arith.truncf %51 : vector<4x16x16xf32> to vector<4x16x16xbf16>
    %53 = arith.truncf %35 : vector<4x16x16xf32> to vector<4x16x16xbf16>
    %cst_21 = arith.constant dense<0.000000e+00> : vector<4x16x16xf32>
    %54 = tpu.matmul %52, %53, %cst_21 {dimension_numbers = #tpu.dot_dimension_numbers<[2], [1], [1], [2], [0, 0, 0, 1, 1, 2], [0], [0]>} : vector<4x16x16xbf16>, vector<4x16x16xbf16>, vector<4x16x16xf32> -> vector<4x16x16xf32>
    %55 = arith.truncf %54 : vector<4x16x16xf32> to vector<4x16x16xbf16>
    %c0_22 = arith.constant 0 : index
    %c0_23 = arith.constant 0 : index
    %c0_24 = arith.constant 0 : index
    %c0_25 = arith.constant 0 : index
    %56 = vector.load %arg6[%c0_22, %c0_23, %c0_24, %c0_25] : memref<2x4x16x64xbf16, #tpu.memory_space<vmem>>, vector<1x4x16x64xbf16>
    %57 = vector.shape_cast %56 : vector<1x4x16x64xbf16> to vector<4x16x64xbf16>
    %cst_26 = arith.constant dense<0.000000e+00> : vector<4x16x64xf32>
    %58 = tpu.matmul %55, %57, %cst_26 {dimension_numbers = #tpu.dot_dimension_numbers<[2], [1], [1], [2], [0, 0, 0, 1, 1, 2], [0], [0]>} : vector<4x16x16xbf16>, vector<4x16x64xbf16>, vector<4x16x64xf32> -> vector<4x16x64xf32>
    %cst_27 = arith.constant dense<0.000000e+00> : vector<16x64xf32>
    %59 = vector.multi_reduction <add>, %58, %cst_27 [0] : vector<4x16x64xf32> to vector<16x64xf32>
    %c0_28 = arith.constant 0 : index
    %c0_29 = arith.constant 0 : index
    %c0_30 = arith.constant 0 : index
    %60 = vector.load %arg7[%c0_28, %c0_29, %c0_30] : memref<2x1x64xf32, #tpu.memory_space<vmem>>, vector<1x1x64xf32>
    %61 = vector.shape_cast %60 : vector<1x1x64xf32> to vector<1x64xf32>
    %62 = vector.broadcast %61 : vector<1x64xf32> to vector<16x64xf32>
    %63 = arith.addf %59, %62 : vector<16x64xf32>
    %64 = arith.addf %0, %63 : vector<16x64xf32>
    %c0_31 = arith.constant 0 : index
    %c0_32 = arith.constant 0 : index
    %c0_33 = arith.constant 0 : index
    %65 = vector.load %arg8[%c0_31, %c0_32, %c0_33] : memref<2x1x64xf32, #tpu.memory_space<vmem>>, vector<1x1x64xf32>
    %66 = vector.shape_cast %65 : vector<1x1x64xf32> to vector<1x64xf32>
    %c0_34 = arith.constant 0 : index
    %c0_35 = arith.constant 0 : index
    %c0_36 = arith.constant 0 : index
    %67 = vector.load %arg9[%c0_34, %c0_35, %c0_36] : memref<2x1x64xf32, #tpu.memory_space<vmem>>, vector<1x1x64xf32>
    %68 = vector.shape_cast %67 : vector<1x1x64xf32> to vector<1x64xf32>
    %cst_37 = arith.constant dense<0.000000e+00> : vector<16xf32>
    %69 = vector.multi_reduction <add>, %64, %cst_37 [1] : vector<16x64xf32> to vector<16xf32>
    %70 = vector.shape_cast %69 : vector<16xf32> to vector<16x1xf32>
    %cst_38 = arith.constant 6.400000e+01 : f32
    %71 = vector.broadcast %cst_38 : f32 to vector<16x1xf32>
    %72 = arith.divf %70, %71 : vector<16x1xf32>
    %73 = vector.broadcast %72 : vector<16x1xf32> to vector<16x64xf32>
    %74 = arith.subf %64, %73 : vector<16x64xf32>
    %75 = arith.mulf %74, %74 : vector<16x64xf32>
    %cst_39 = arith.constant dense<0.000000e+00> : vector<16xf32>
    %76 = vector.multi_reduction <add>, %75, %cst_39 [1] : vector<16x64xf32> to vector<16xf32>
    %77 = vector.shape_cast %76 : vector<16xf32> to vector<16x1xf32>
    %cst_40 = arith.constant 6.400000e+01 : f32
    %78 = vector.broadcast %cst_40 : f32 to vector<16x1xf32>
    %79 = arith.divf %77, %78 : vector<16x1xf32>
    %cst_41 = arith.constant 9.99999974E-6 : f32
    %80 = vector.broadcast %cst_41 : f32 to vector<16x1xf32>
    %81 = arith.addf %79, %80 : vector<16x1xf32>
    %82 = math.rsqrt %81 : vector<16x1xf32>
    %83 = vector.broadcast %82 : vector<16x1xf32> to vector<16x64xf32>
    %84 = arith.mulf %74, %83 : vector<16x64xf32>
    %85 = vector.broadcast %66 : vector<1x64xf32> to vector<16x64xf32>
    %86 = arith.mulf %84, %85 : vector<16x64xf32>
    %87 = vector.broadcast %68 : vector<1x64xf32> to vector<16x64xf32>
    %88 = arith.addf %86, %87 : vector<16x64xf32>
    %89 = arith.truncf %88 : vector<16x64xf32> to vector<16x64xbf16>
    %c0_42 = arith.constant 0 : index
    %c0_43 = arith.constant 0 : index
    %c0_44 = arith.constant 0 : index
    %90 = vector.load %arg10[%c0_42, %c0_43, %c0_44] : memref<2x64x256xbf16, #tpu.memory_space<vmem>>, vector<1x64x256xbf16>
    %91 = vector.shape_cast %90 : vector<1x64x256xbf16> to vector<64x256xbf16>
    %cst_45 = arith.constant dense<0.000000e+00> : vector<16x256xf32>
    %92 = tpu.matmul %89, %91, %cst_45 {dimension_numbers = #tpu.dot_dimension_numbers<[1], [0], [0], [1], [0, 0, 1, 1], [], []>} : vector<16x64xbf16>, vector<64x256xbf16>, vector<16x256xf32> -> vector<16x256xf32>
    %c0_46 = arith.constant 0 : index
    %c0_47 = arith.constant 0 : index
    %c0_48 = arith.constant 0 : index
    %93 = vector.load %arg11[%c0_46, %c0_47, %c0_48] : memref<2x1x256xf32, #tpu.memory_space<vmem>>, vector<1x1x256xf32>
    %94 = vector.shape_cast %93 : vector<1x1x256xf32> to vector<1x256xf32>
    %95 = vector.broadcast %94 : vector<1x256xf32> to vector<16x256xf32>
    %96 = arith.addf %92, %95 : vector<16x256xf32>
    %cst_49 = arith.constant 0.000000e+00 : f32
    %97 = vector.broadcast %cst_49 : f32 to vector<16x256xf32>
    %98 = arith.maximumf %96, %97 : vector<16x256xf32>
    %99 = arith.truncf %98 : vector<16x256xf32> to vector<16x256xbf16>
    %c0_50 = arith.constant 0 : index
    %c0_51 = arith.constant 0 : index
    %c0_52 = arith.constant 0 : index
    %100 = vector.load %arg12[%c0_50, %c0_51, %c0_52] : memref<2x256x64xbf16, #tpu.memory_space<vmem>>, vector<1x256x64xbf16>
    %101 = vector.shape_cast %100 : vector<1x256x64xbf16> to vector<256x64xbf16>
    %cst_53 = arith.constant dense<0.000000e+00> : vector<16x64xf32>
    %102 = tpu.matmul %99, %101, %cst_53 {dimension_numbers = #tpu.dot_dimension_numbers<[1], [0], [0], [1], [0, 0, 1, 1], [], []>} : vector<16x256xbf16>, vector<256x64xbf16>, vector<16x64xf32> -> vector<16x64xf32>
    %c0_54 = arith.constant 0 : index
    %c0_55 = arith.constant 0 : index
    %c0_56 = arith.constant 0 : index
    %103 = vector.load %arg13[%c0_54, %c0_55, %c0_56] : memref<2x1x64xf32, #tpu.memory_space<vmem>>, vector<1x1x64xf32>
    %104 = vector.shape_cast %103 : vector<1x1x64xf32> to vector<1x64xf32>
    %105 = vector.broadcast %104 : vector<1x64xf32> to vector<16x64xf32>
    %106 = arith.addf %102, %105 : vector<16x64xf32>
    %107 = arith.addf %64, %106 : vector<16x64xf32>
    %c1 = arith.constant 1 : index
    %c0_57 = arith.constant 0 : index
    %c0_58 = arith.constant 0 : index
    %108 = vector.load %arg3[%c1, %c0_57, %c0_58] : memref<2x1x64xf32, #tpu.memory_space<vmem>>, vector<1x1x64xf32>
    %109 = vector.shape_cast %108 : vector<1x1x64xf32> to vector<1x64xf32>
    %c1_59 = arith.constant 1 : index
    %c0_60 = arith.constant 0 : index
    %c0_61 = arith.constant 0 : index
    %110 = vector.load %arg4[%c1_59, %c0_60, %c0_61] : memref<2x1x64xf32, #tpu.memory_space<vmem>>, vector<1x1x64xf32>
    %111 = vector.shape_cast %110 : vector<1x1x64xf32> to vector<1x64xf32>
    %cst_62 = arith.constant dense<0.000000e+00> : vector<16xf32>
    %112 = vector.multi_reduction <add>, %107, %cst_62 [1] : vector<16x64xf32> to vector<16xf32>
    %113 = vector.shape_cast %112 : vector<16xf32> to vector<16x1xf32>
    %cst_63 = arith.constant 6.400000e+01 : f32
    %114 = vector.broadcast %cst_63 : f32 to vector<16x1xf32>
    %115 = arith.divf %113, %114 : vector<16x1xf32>
    %116 = vector.broadcast %115 : vector<16x1xf32> to vector<16x64xf32>
    %117 = arith.subf %107, %116 : vector<16x64xf32>
    %118 = arith.mulf %117, %117 : vector<16x64xf32>
    %cst_64 = arith.constant dense<0.000000e+00> : vector<16xf32>
    %119 = vector.multi_reduction <add>, %118, %cst_64 [1] : vector<16x64xf32> to vector<16xf32>
    %120 = vector.shape_cast %119 : vector<16xf32> to vector<16x1xf32>
    %cst_65 = arith.constant 6.400000e+01 : f32
    %121 = vector.broadcast %cst_65 : f32 to vector<16x1xf32>
    %122 = arith.divf %120, %121 : vector<16x1xf32>
    %cst_66 = arith.constant 9.99999974E-6 : f32
    %123 = vector.broadcast %cst_66 : f32 to vector<16x1xf32>
    %124 = arith.addf %122, %123 : vector<16x1xf32>
    %125 = math.rsqrt %124 : vector<16x1xf32>
    %126 = vector.broadcast %125 : vector<16x1xf32> to vector<16x64xf32>
    %127 = arith.mulf %117, %126 : vector<16x64xf32>
    %128 = vector.broadcast %109 : vector<1x64xf32> to vector<16x64xf32>
    %129 = arith.mulf %127, %128 : vector<16x64xf32>
    %130 = vector.broadcast %111 : vector<1x64xf32> to vector<16x64xf32>
    %131 = arith.addf %129, %130 : vector<16x64xf32>
    %132 = arith.truncf %131 : vector<16x64xf32> to vector<16x64xbf16>
    %133 = vector.shape_cast %132 : vector<16x64xbf16> to vector<1x16x64xbf16>
    %134 = vector.shape_cast %133 : vector<1x16x64xbf16> to vector<1x16x64xbf16>
    %135 = vector.broadcast %134 : vector<1x16x64xbf16> to vector<12x16x64xbf16>
    %c1_67 = arith.constant 1 : index
    %c0_68 = arith.constant 0 : index
    %c0_69 = arith.constant 0 : index
    %c0_70 = arith.constant 0 : index
    %136 = vector.load %arg5[%c1_67, %c0_68, %c0_69, %c0_70] : memref<2x12x64x16xbf16, #tpu.memory_space<vmem>>, vector<1x12x64x16xbf16>
    %137 = vector.shape_cast %136 : vector<1x12x64x16xbf16> to vector<12x64x16xbf16>
    %cst_71 = arith.constant dense<0.000000e+00> : vector<12x16x16xf32>
    %138 = tpu.matmul %135, %137, %cst_71 {dimension_numbers = #tpu.dot_dimension_numbers<[2], [1], [1], [2], [0, 0, 0, 1, 1, 2], [0], [0]>} : vector<12x16x64xbf16>, vector<12x64x16xbf16>, vector<12x16x16xf32> -> vector<12x16x16xf32>
    %139 = vector.extract_strided_slice %138 {offsets = [0, 0, 0], sizes = [4, 16, 16], strides = [1, 1, 1]} : vector<12x16x16xf32> to vector<4x16x16xf32>
    %140 = vector.extract_strided_slice %138 {offsets = [4, 0, 0], sizes = [4, 16, 16], strides = [1, 1, 1]} : vector<12x16x16xf32> to vector<4x16x16xf32>
    %141 = vector.extract_strided_slice %138 {offsets = [8, 0, 0], sizes = [4, 16, 16], strides = [1, 1, 1]} : vector<12x16x16xf32> to vector<4x16x16xf32>
    %142 = arith.truncf %139 : vector<4x16x16xf32> to vector<4x16x16xbf16>
    %143 = arith.truncf %140 : vector<4x16x16xf32> to vector<4x16x16xbf16>
    %cst_72 = arith.constant dense<0.000000e+00> : vector<4x16x16xf32>
    %144 = tpu.matmul %142, %143, %cst_72 {dimension_numbers = #tpu.dot_dimension_numbers<[2], [2], [1], [1], [0, 0, 0, 1, 1, 1], [0], [0]>} : vector<4x16x16xbf16>, vector<4x16x16xbf16>, vector<4x16x16xf32> -> vector<4x16x16xf32>
    %145 = vector.shape_cast %1 : vector<16x16xf32> to vector<1x16x16xf32>
    %146 = vector.broadcast %145 : vector<1x16x16xf32> to vector<4x16x16xf32>
    %147 = arith.addf %144, %146 : vector<4x16x16xf32>
    %cst_73 = arith.constant dense<0xFF800000> : vector<4x16xf32>
    %148 = vector.multi_reduction <maximumf>, %147, %cst_73 [2] : vector<4x16x16xf32> to vector<4x16xf32>
    %149 = vector.shape_cast %148 : vector<4x16xf32> to vector<4x16x1xf32>
    %150 = vector.broadcast %149 : vector<4x16x1xf32> to vector<4x16x16xf32>
    %151 = arith.subf %147, %150 : vector<4x16x16xf32>
    %152 = math.exp %151 : vector<4x16x16xf32>
    %cst_74 = arith.constant dense<0.000000e+00> : vector<4x16xf32>
    %153 = vector.multi_reduction <add>, %152, %cst_74 [2] : vector<4x16x16xf32> to vector<4x16xf32>
    %154 = vector.shape_cast %153 : vector<4x16xf32> to vector<4x16x1xf32>
    %155 = tpu.reciprocal %154 {approx = true} : vector<4x16x1xf32> -> vector<4x16x1xf32>
    %156 = vector.broadcast %155 : vector<4x16x1xf32> to vector<4x16x16xf32>
    %157 = arith.mulf %152, %156 : vector<4x16x16xf32>
    %158 = arith.truncf %157 : vector<4x16x16xf32> to vector<4x16x16xbf16>
    %159 = arith.truncf %141 : vector<4x16x16xf32> to vector<4x16x16xbf16>
    %cst_75 = arith.constant dense<0.000000e+00> : vector<4x16x16xf32>
    %160 = tpu.matmul %158, %159, %cst_75 {dimension_numbers = #tpu.dot_dimension_numbers<[2], [1], [1], [2], [0, 0, 0, 1, 1, 2], [0], [0]>} : vector<4x16x16xbf16>, vector<4x16x16xbf16>, vector<4x16x16xf32> -> vector<4x16x16xf32>
    %161 = arith.truncf %160 : vector<4x16x16xf32> to vector<4x16x16xbf16>
    %c1_76 = arith.constant 1 : index
    %c0_77 = arith.constant 0 : index
    %c0_78 = arith.constant 0 : index
    %c0_79 = arith.constant 0 : index
    %162 = vector.load %arg6[%c1_76, %c0_77, %c0_78, %c0_79] : memref<2x4x16x64xbf16, #tpu.memory_space<vmem>>, vector<1x4x16x64xbf16>
    %163 = vector.shape_cast %162 : vector<1x4x16x64xbf16> to vector<4x16x64xbf16>
    %cst_80 = arith.constant dense<0.000000e+00> : vector<4x16x64xf32>
    %164 = tpu.matmul %161, %163, %cst_80 {dimension_numbers = #tpu.dot_dimension_numbers<[2], [1], [1], [2], [0, 0, 0, 1, 1, 2], [0], [0]>} : vector<4x16x16xbf16>, vector<4x16x64xbf16>, vector<4x16x64xf32> -> vector<4x16x64xf32>
    %cst_81 = arith.constant dense<0.000000e+00> : vector<16x64xf32>
    %165 = vector.multi_reduction <add>, %164, %cst_81 [0] : vector<4x16x64xf32> to vector<16x64xf32>
    %c1_82 = arith.constant 1 : index
    %c0_83 = arith.constant 0 : index
    %c0_84 = arith.constant 0 : index
    %166 = vector.load %arg7[%c1_82, %c0_83, %c0_84] : memref<2x1x64xf32, #tpu.memory_space<vmem>>, vector<1x1x64xf32>
    %167 = vector.shape_cast %166 : vector<1x1x64xf32> to vector<1x64xf32>
    %168 = vector.broadcast %167 : vector<1x64xf32> to vector<16x64xf32>
    %169 = arith.addf %165, %168 : vector<16x64xf32>
    %170 = arith.addf %107, %169 : vector<16x64xf32>
    %c1_85 = arith.constant 1 : index
    %c0_86 = arith.constant 0 : index
    %c0_87 = arith.constant 0 : index
    %171 = vector.load %arg8[%c1_85, %c0_86, %c0_87] : memref<2x1x64xf32, #tpu.memory_space<vmem>>, vector<1x1x64xf32>
    %172 = vector.shape_cast %171 : vector<1x1x64xf32> to vector<1x64xf32>
    %c1_88 = arith.constant 1 : index
    %c0_89 = arith.constant 0 : index
    %c0_90 = arith.constant 0 : index
    %173 = vector.load %arg9[%c1_88, %c0_89, %c0_90] : memref<2x1x64xf32, #tpu.memory_space<vmem>>, vector<1x1x64xf32>
    %174 = vector.shape_cast %173 : vector<1x1x64xf32> to vector<1x64xf32>
    %cst_91 = arith.constant dense<0.000000e+00> : vector<16xf32>
    %175 = vector.multi_reduction <add>, %170, %cst_91 [1] : vector<16x64xf32> to vector<16xf32>
    %176 = vector.shape_cast %175 : vector<16xf32> to vector<16x1xf32>
    %cst_92 = arith.constant 6.400000e+01 : f32
    %177 = vector.broadcast %cst_92 : f32 to vector<16x1xf32>
    %178 = arith.divf %176, %177 : vector<16x1xf32>
    %179 = vector.broadcast %178 : vector<16x1xf32> to vector<16x64xf32>
    %180 = arith.subf %170, %179 : vector<16x64xf32>
    %181 = arith.mulf %180, %180 : vector<16x64xf32>
    %cst_93 = arith.constant dense<0.000000e+00> : vector<16xf32>
    %182 = vector.multi_reduction <add>, %181, %cst_93 [1] : vector<16x64xf32> to vector<16xf32>
    %183 = vector.shape_cast %182 : vector<16xf32> to vector<16x1xf32>
    %cst_94 = arith.constant 6.400000e+01 : f32
    %184 = vector.broadcast %cst_94 : f32 to vector<16x1xf32>
    %185 = arith.divf %183, %184 : vector<16x1xf32>
    %cst_95 = arith.constant 9.99999974E-6 : f32
    %186 = vector.broadcast %cst_95 : f32 to vector<16x1xf32>
    %187 = arith.addf %185, %186 : vector<16x1xf32>
    %188 = math.rsqrt %187 : vector<16x1xf32>
    %189 = vector.broadcast %188 : vector<16x1xf32> to vector<16x64xf32>
    %190 = arith.mulf %180, %189 : vector<16x64xf32>
    %191 = vector.broadcast %172 : vector<1x64xf32> to vector<16x64xf32>
    %192 = arith.mulf %190, %191 : vector<16x64xf32>
    %193 = vector.broadcast %174 : vector<1x64xf32> to vector<16x64xf32>
    %194 = arith.addf %192, %193 : vector<16x64xf32>
    %195 = arith.truncf %194 : vector<16x64xf32> to vector<16x64xbf16>
    %c1_96 = arith.constant 1 : index
    %c0_97 = arith.constant 0 : index
    %c0_98 = arith.constant 0 : index
    %196 = vector.load %arg10[%c1_96, %c0_97, %c0_98] : memref<2x64x256xbf16, #tpu.memory_space<vmem>>, vector<1x64x256xbf16>
    %197 = vector.shape_cast %196 : vector<1x64x256xbf16> to vector<64x256xbf16>
    %cst_99 = arith.constant dense<0.000000e+00> : vector<16x256xf32>
    %198 = tpu.matmul %195, %197, %cst_99 {dimension_numbers = #tpu.dot_dimension_numbers<[1], [0], [0], [1], [0, 0, 1, 1], [], []>} : vector<16x64xbf16>, vector<64x256xbf16>, vector<16x256xf32> -> vector<16x256xf32>
    %c1_100 = arith.constant 1 : index
    %c0_101 = arith.constant 0 : index
    %c0_102 = arith.constant 0 : index
    %199 = vector.load %arg11[%c1_100, %c0_101, %c0_102] : memref<2x1x256xf32, #tpu.memory_space<vmem>>, vector<1x1x256xf32>
    %200 = vector.shape_cast %199 : vector<1x1x256xf32> to vector<1x256xf32>
    %201 = vector.broadcast %200 : vector<1x256xf32> to vector<16x256xf32>
    %202 = arith.addf %198, %201 : vector<16x256xf32>
    %cst_103 = arith.constant 0.000000e+00 : f32
    %203 = vector.broadcast %cst_103 : f32 to vector<16x256xf32>
    %204 = arith.maximumf %202, %203 : vector<16x256xf32>
    %205 = arith.truncf %204 : vector<16x256xf32> to vector<16x256xbf16>
    %c1_104 = arith.constant 1 : index
    %c0_105 = arith.constant 0 : index
    %c0_106 = arith.constant 0 : index
    %206 = vector.load %arg12[%c1_104, %c0_105, %c0_106] : memref<2x256x64xbf16, #tpu.memory_space<vmem>>, vector<1x256x64xbf16>
    %207 = vector.shape_cast %206 : vector<1x256x64xbf16> to vector<256x64xbf16>
    %cst_107 = arith.constant dense<0.000000e+00> : vector<16x64xf32>
    %208 = tpu.matmul %205, %207, %cst_107 {dimension_numbers = #tpu.dot_dimension_numbers<[1], [0], [0], [1], [0, 0, 1, 1], [], []>} : vector<16x256xbf16>, vector<256x64xbf16>, vector<16x64xf32> -> vector<16x64xf32>
    %c1_108 = arith.constant 1 : index
    %c0_109 = arith.constant 0 : index
    %c0_110 = arith.constant 0 : index
    %209 = vector.load %arg13[%c1_108, %c0_109, %c0_110] : memref<2x1x64xf32, #tpu.memory_space<vmem>>, vector<1x1x64xf32>
    %210 = vector.shape_cast %209 : vector<1x1x64xf32> to vector<1x64xf32>
    %211 = vector.broadcast %210 : vector<1x64xf32> to vector<16x64xf32>
    %212 = arith.addf %208, %211 : vector<16x64xf32>
    %213 = arith.addf %170, %212 : vector<16x64xf32>
    %c0_111 = arith.constant 0 : index
    %c0_112 = arith.constant 0 : index
    %214 = vector.load %arg14[%c0_111, %c0_112] : memref<1x64xf32, #tpu.memory_space<vmem>>, vector<1x64xf32>
    %c0_113 = arith.constant 0 : index
    %c0_114 = arith.constant 0 : index
    %215 = vector.load %arg15[%c0_113, %c0_114] : memref<1x64xf32, #tpu.memory_space<vmem>>, vector<1x64xf32>
    %cst_115 = arith.constant dense<0.000000e+00> : vector<16xf32>
    %216 = vector.multi_reduction <add>, %213, %cst_115 [1] : vector<16x64xf32> to vector<16xf32>
    %217 = vector.shape_cast %216 : vector<16xf32> to vector<16x1xf32>
    %cst_116 = arith.constant 6.400000e+01 : f32
    %218 = vector.broadcast %cst_116 : f32 to vector<16x1xf32>
    %219 = arith.divf %217, %218 : vector<16x1xf32>
    %220 = vector.broadcast %219 : vector<16x1xf32> to vector<16x64xf32>
    %221 = arith.subf %213, %220 : vector<16x64xf32>
    %222 = arith.mulf %221, %221 : vector<16x64xf32>
    %cst_117 = arith.constant dense<0.000000e+00> : vector<16xf32>
    %223 = vector.multi_reduction <add>, %222, %cst_117 [1] : vector<16x64xf32> to vector<16xf32>
    %224 = vector.shape_cast %223 : vector<16xf32> to vector<16x1xf32>
    %cst_118 = arith.constant 6.400000e+01 : f32
    %225 = vector.broadcast %cst_118 : f32 to vector<16x1xf32>
    %226 = arith.divf %224, %225 : vector<16x1xf32>
    %cst_119 = arith.constant 9.99999974E-6 : f32
    %227 = vector.broadcast %cst_119 : f32 to vector<16x1xf32>
    %228 = arith.addf %226, %227 : vector<16x1xf32>
    %229 = math.rsqrt %228 : vector<16x1xf32>
    %230 = vector.broadcast %229 : vector<16x1xf32> to vector<16x64xf32>
    %231 = arith.mulf %221, %230 : vector<16x64xf32>
    %232 = vector.broadcast %214 : vector<1x64xf32> to vector<16x64xf32>
    %233 = arith.mulf %231, %232 : vector<16x64xf32>
    %234 = vector.broadcast %215 : vector<1x64xf32> to vector<16x64xf32>
    %235 = arith.addf %233, %234 : vector<16x64xf32>
    %236 = arith.truncf %235 : vector<16x64xf32> to vector<16x64xbf16>
    %c0_120 = arith.constant 0 : index
    %c0_121 = arith.constant 0 : index
    %237 = vector.load %arg16[%c0_120, %c0_121] : memref<64x128xbf16, #tpu.memory_space<vmem>>, vector<64x128xbf16>
    %cst_122 = arith.constant dense<0.000000e+00> : vector<16x128xf32>
    %238 = tpu.matmul %236, %237, %cst_122 {dimension_numbers = #tpu.dot_dimension_numbers<[1], [0], [0], [1], [0, 0, 1, 1], [], []>} : vector<16x64xbf16>, vector<64x128xbf16>, vector<16x128xf32> -> vector<16x128xf32>
    %c0_123 = arith.constant 0 : index
    %c0_124 = arith.constant 0 : index
    %239 = vector.load %arg17[%c0_123, %c0_124] : memref<16x128xf32, #tpu.memory_space<vmem>>, vector<16x128xf32>
    tpu.vector_store %arg17[%c0_123, %c0_124], %238 {strides = array<i32>} : memref<16x128xf32, #tpu.memory_space<vmem>>, vector<16x128xf32>,
    return
  }
  func.func @transform_0(%arg0: i32) -> (i32, i32) {
    %c0_i32 = arith.constant 0 : i32
    %c0_i32_0 = arith.constant 0 : i32
    return %arg0, %c0_i32 : i32, i32
  }
  func.func @transform_1(%arg0: i32) -> (i32, i32) {
    %c0_i32 = arith.constant 0 : i32
    %c0_i32_0 = arith.constant 0 : i32
    %c0_i32_1 = arith.constant 0 : i32
    return %c0_i32, %c0_i32_0 : i32, i32
  }
  func.func @transform_2(%arg0: i32) -> (i32, i32, i32) {
    %c0_i32 = arith.constant 0 : i32
    %c0_i32_0 = arith.constant 0 : i32
    %c0_i32_1 = arith.constant 0 : i32
    %c0_i32_2 = arith.constant 0 : i32
    return %c0_i32, %c0_i32_0, %c0_i32_1 : i32, i32, i32
  }
  func.func @transform_3(%arg0: i32) -> (i32, i32, i32) {
    %c0_i32 = arith.constant 0 : i32
    %c0_i32_0 = arith.constant 0 : i32
    %c0_i32_1 = arith.constant 0 : i32
    %c0_i32_2 = arith.constant 0 : i32
    return %c0_i32, %c0_i32_0, %c0_i32_1 : i32, i32, i32
  }
  func.func @transform_4(%arg0: i32) -> (i32, i32, i32, i32) {
    %c0_i32 = arith.constant 0 : i32
    %c0_i32_0 = arith.constant 0 : i32
    %c0_i32_1 = arith.constant 0 : i32
    %c0_i32_2 = arith.constant 0 : i32
    %c0_i32_3 = arith.constant 0 : i32
    return %c0_i32, %c0_i32_0, %c0_i32_1, %c0_i32_2 : i32, i32, i32, i32
  }
  func.func @transform_5(%arg0: i32) -> (i32, i32, i32, i32) {
    %c0_i32 = arith.constant 0 : i32
    %c0_i32_0 = arith.constant 0 : i32
    %c0_i32_1 = arith.constant 0 : i32
    %c0_i32_2 = arith.constant 0 : i32
    %c0_i32_3 = arith.constant 0 : i32
    return %c0_i32, %c0_i32_0, %c0_i32_1, %c0_i32_2 : i32, i32, i32, i32
  }
  func.func @transform_6(%arg0: i32) -> (i32, i32, i32) {
    %c0_i32 = arith.constant 0 : i32
    %c0_i32_0 = arith.constant 0 : i32
    %c0_i32_1 = arith.constant 0 : i32
    %c0_i32_2 = arith.constant 0 : i32
    return %c0_i32, %c0_i32_0, %c0_i32_1 : i32, i32, i32
  }
  func.func @transform_7(%arg0: i32) -> (i32, i32, i32) {
    %c0_i32 = arith.constant 0 : i32
    %c0_i32_0 = arith.constant 0 : i32
    %c0_i32_1 = arith.constant 0 : i32
    %c0_i32_2 = arith.constant 0 : i32
    return %c0_i32, %c0_i32_0, %c0_i32_1 : i32, i32, i32
  }
  func.func @transform_8(%arg0: i32) -> (i32, i32, i32) {
    %c0_i32 = arith.constant 0 : i32
    %c0_i32_0 = arith.constant 0 : i32
    %c0_i32_1 = arith.constant 0 : i32
    %c0_i32_2 = arith.constant 0 : i32
    return %c0_i32, %c0_i32_0, %c0_i32_1 : i32, i32, i32
  }
  func.func @transform_9(%arg0: i32) -> (i32, i32, i32) {
    %c0_i32 = arith.constant 0 : i32
    %c0_i32_0 = arith.constant 0 : i32
    %c0_i32_1 = arith.constant 0 : i32
    %c0_i32_2 = arith.constant 0 : i32
    return %c0_i32, %c0_i32_0, %c0_i32_1 : i32, i32, i32
  }
  func.func @transform_10(%arg0: i32) -> (i32, i32, i32) {
    %c0_i32 = arith.constant 0 : i32
    %c0_i32_0 = arith.constant 0 : i32
    %c0_i32_1 = arith.constant 0 : i32
    %c0_i32_2 = arith.constant 0 : i32
    return %c0_i32, %c0_i32_0, %c0_i32_1 : i32, i32, i32
  }
  func.func @transform_11(%arg0: i32) -> (i32, i32, i32) {
    %c0_i32 = arith.constant 0 : i32
    %c0_i32_0 = arith.constant 0 : i32
    %c0_i32_1 = arith.constant 0 : i32
    %c0_i32_2 = arith.constant 0 : i32
    return %c0_i32, %c0_i32_0, %c0_i32_1 : i32, i32, i32
  }
  func.func @transform_12(%arg0: i32) -> (i32, i32, i32) {
    %c0_i32 = arith.constant 0 : i32
    %c0_i32_0 = arith.constant 0 : i32
    %c0_i32_1 = arith.constant 0 : i32
    %c0_i32_2 = arith.constant 0 : i32
    return %c0_i32, %c0_i32_0, %c0_i32_1 : i32, i32, i32
  }
  func.func @transform_13(%arg0: i32) -> (i32, i32) {
    %c0_i32 = arith.constant 0 : i32
    %c0_i32_0 = arith.constant 0 : i32
    %c0_i32_1 = arith.constant 0 : i32
    return %c0_i32, %c0_i32_0 : i32, i32
  }
  func.func @transform_14(%arg0: i32) -> (i32, i32) {
    %c0_i32 = arith.constant 0 : i32
    %c0_i32_0 = arith.constant 0 : i32
    %c0_i32_1 = arith.constant 0 : i32
    return %c0_i32, %c0_i32_0 : i32, i32
  }
  func.func @transform_15(%arg0: i32) -> (i32, i32) {
    %c0_i32 = arith.constant 0 : i32
    %c0_i32_0 = arith.constant 0 : i32
    %c0_i32_1 = arith.constant 0 : i32
    return %c0_i32, %c0_i32_0 : i32, i32
  }
  func.func @transform_16(%arg0: i32) -> (i32, i32) {
    %c0_i32 = arith.constant 0 : i32
    %c0_i32_0 = arith.constant 0 : i32
    return %arg0, %c0_i32 : i32, i32
  }
}

</mosaic_0001>

<bundles_post_ra>
// kernel: tpu_custom_call.1
= control target key start
LH: loop header
LB: loop body
LE: loop exit
PB: predicated region body
PF: predicated region fallthrough
CT: control target
= control target key end

     0   :  { %s7259_s0 = inlined_call_operand.vmem [shape: f32[32,64], index: 0, kind: input, shape index: {}]   ;;  %s7260_s1 = inlined_call_operand.vmem [shape: f32[16,16], index: 1, kind: input, shape index: {}]   ;;  %s7261_s2 = inlined_call_operand.vmem [shape: f32[2,1,64], index: 2, kind: input, shape index: {}]   ;;  %s7262_s3 = inlined_call_operand.vmem [shape: f32[2,1,64], index: 3, kind: input, shape index: {}]   ;;  %s7263_s4 = inlined_call_operand.vmem [shape: bf16[2,12,64,16], index: 4, kind: input, shape index: {}]   ;;  %s7264_s5 = inlined_call_operand.vmem [shape: bf16[2,4,16,64], index: 5, kind: input, shape index: {}]   ;;  %s7265_s6 = inlined_call_operand.vmem [shape: f32[2,1,64], index: 6, kind: input, shape index: {}]   ;;  %s7266_s7 = inlined_call_operand.vmem [shape: f32[2,1,64], index: 7, kind: input, shape index: {}]   ;;  %s7267_s8 = inlined_call_operand.vmem [shape: f32[2,1,64], index: 8, kind: input, shape index: {}]   ;;  %s7268_s9 = inlined_call_operand.vmem [shape: bf16[2,64,256], index: 9, kind: input, shape index: {}]   ;;  %s7269_s10 = inlined_call_operand.vmem [shape: f32[2,1,256], index: 10, kind: input, shape index: {}]   ;;  %s7270_s11 = inlined_call_operand.vmem [shape: bf16[2,256,64], index: 11, kind: input, shape index: {}]   ;;  %s7271_s12 = inlined_call_operand.vmem [shape: f32[2,1,64], index: 12, kind: input, shape index: {}]   ;;  %s7272_s13 = inlined_call_operand.vmem [shape: f32[1,64], index: 13, kind: input, shape index: {}]   ;;  %s7273_s14 = inlined_call_operand.vmem [shape: f32[1,64], index: 14, kind: input, shape index: {}]   ;;  %s7274_s15 = inlined_call_operand.vmem [shape: bf16[64,128], index: 15, kind: input, shape index: {}]   ;;  %s7275_s16 = inlined_call_operand.hbm [shape: f32[32,128], index: 16, kind: output, shape index: {}]  }
   0x1   :  { %7280 = sst [smem:[#allocation9_spill]] %s7259_s0 }
   0x2   :  { %7281 = sst [smem:[#allocation10_spill]] %s7260_s1 }
   0x3   :  { %21 = vsyncpa [#allocation3], 0 }
   0x4   :  { %23 = vsyncpa [#allocation3 + $0x1], 0  ;;  %s6166_s21 = smov 0   ;;  %s6168_s22 = smov 0  }
   0x5   :  { %s6170_s23 = smov 0   ;;  %s6172_s24 = smov 0  }
   0x6 LB: > { %7282 = sst [smem:[#allocation5_spill]] %s6069_s23  ;;  %s6187_s25 = sadd.s32 4294967295, %s6073_s24   ;;  %s6073_s24 = sphi %s6172_s24, %s7291_s24   ;;  %s6069_s23 = sphi %s6170_s23, %s7293_s23   ;;  %s6065_s22 = sphi %s6168_s22, %s7295_s22   ;;  %s6061_s21 = sphi %s6166_s21, %s7294_s21  }
   0x7   : > { %s4669_s26 = sadd.s32 4294967294, %s6073_s24   ;;  %s6191_s27 = sadd.s32 1, %s6073_s24  }
   0x8   : > { %7283 = sst [smem:[#allocation6_spill]] %s6191_s27  ;;  %s377_s28 = sadd.s32 1, %s6069_s23 }
   0x9   : > { %s374_s29 = ssub.s32 %s6073_s24, %s6191_s27  ;;  %p387_p0 = scmp.ne.s32.totalorder %s6069_s23, %s6065_s22 }
   0xa   : > { %p375_p1 = scmp.eq.s32.totalorder %s374_s29, 0  ;;  %p388_p2 = scmp.eq.s32.totalorder %s6187_s25, 1 }
   0xb   : > { %p393_p3 = scmp.ne.s32.totalorder %s6065_s22, %s6061_s21  ;;  %p394_p4 = scmp.eq.s32.totalorder %s4669_s26, 1 }
   0xc   : > { %s6202_s30 = scalar_select %p375_p1, %s6069_s23, %s377_s28  }
   0xd   : > { %p6204_p5 = por %p388_p2, %p387_p0  ;;  %p6208_p6 = por %p394_p4, %p393_p3 }
   0xe   : > { %7284 = sst [smem:[#allocation7_spill]] %s6202_s30  ;;  %p4672_p7 = scmp.ge.s32.totalorder %s6073_s24, 1 }
   0xf   : > { %s7286_s17 = scalar_select %p6208_p6, 1, 0 }
  0x10   : > { %p466_p8 = scmp.lt.s32.totalorder %s6073_s24, 3 }
  0x11   : > { %7287 = sst [smem:[#allocation8_spill]] %s7286_s17 }
  0x12   : > { %p467_p9 = pnand %p4672_p7, %p466_p8 }
  0x13   : > { %s4674_s18 = sshll.u32 (!%p467_p9), %s6187_s25, 1  ;;  %vm530_vm0 = vcmask (!%p467_p9), 523264   ;;  %s7288_s28 = sld [smem:[#allocation9_spill]] (!%p467_p9)  ;;  %v5759_v14 = vld [vmem:[%s7263_s4] sm:$0xff] (!%p467_p9)   ;;  %v6075_v16 = vmov (!%p467_p9), 0.0   ;;  %v5761_v17 = vld [vmem:[%s7263_s4 + $0x8] sm:$0xff] (!%p467_p9)  }
  0x14   : > { %470 = sbr.rel (%p467_p9) target bundleno = 5227 (0x146b), region = 84  ;;  %p517_p10 = scmp.lt.s32.totalorder (!%p467_p9), %s4674_s18, 3  ;;  %v5760_v15 = vld [vmem:[%s7263_s4 + $0x20] sm:$0xff] (!%p467_p9)   ;;  %5271 = vmatprep.subr.bf16.mxu0 (!%p467_p9), %v6075_v16  ;;  %5283 = vmatprep.subr.bf16.mxu1 (!%p467_p9), %v6075_v16  ;;  %v5762_v18 = vld [vmem:[%s7263_s4 + $0x28] sm:$0xff] (!%p467_p9)   ;;  %v5763_v19 = vld [vmem:[%s7263_s4 + $0x10] sm:$0xff] (!%p467_p9)   ;;  %vm6076_vm1 = vmmov (!%p467_p9), 0  }
  0x15   : > { %5272 = vmatpush3.bf16.msra.mxu0 (!%p467_p9), %v5759_v14  ;;  %5284 = vmatpush3.bf16.msra.mxu1 (!%p467_p9), %v5760_v15  ;;  %v5764_v20 = vld [vmem:[%s7263_s4 + $0x30] sm:$0xff] (!%p467_p9)   ;;  %v5765_v21 = vld [vmem:[%s7263_s4 + $0x18] sm:$0xff] (!%p467_p9)   ;;  %v4676_v31 = vld [vmem:[%s7261_s2] ss:$0 sm:$0xff] (!%p467_p9)  ;;  %vm1462_vm2 = vcmask (!%p467_p9), 130048   ;;  %s7289_s1 = sld [smem:[#allocation10_spill]] (!%p467_p9) }
  0x16   : > { %5273 = vmatprep.subr.bf16.mxu0 (!%p467_p9), %v6075_v16  ;;  %5285 = vmatprep.subr.bf16.mxu1 (!%p467_p9), %v6075_v16  ;;  %v5766_v22 = vld [vmem:[%s7263_s4 + $0x38] sm:$0xff] (!%p467_p9)   ;;  %v4677_v35 = vld [vmem:[%s7262_s3] ss:$0 sm:$0xff] (!%p467_p9)  ;;  %v5769_v42 = vld [vmem:[%s7263_s4 + $0x48] sm:$0xff] (!%p467_p9)   ;;  %s513_s23 = sand.u32 (!%p467_p9), 1, %s6065_s22   ;;  %s5053_s26 = sshll.u32 (!%p467_p9), %s6187_s25, 8 }
  0x17   : > { %5279 = vmatprep.mubr.msk.bf16.mxu0 (!%p467_p9), %vm6076_vm1, %v6075_v16  ;;  %5291 = vmatprep.mubr.msk.bf16.mxu1 (!%p467_p9), %vm6076_vm1, %v6075_v16  ;;  %v5767_v39 = vld [vmem:[%s7263_s4 + $0x40] sm:$0xff] (!%p467_p9)   ;;  %v5770_v43 = vld [vmem:[%s7263_s4 + $0x68] sm:$0xff] (!%p467_p9)   ;;  %v5771_v44 = vld [vmem:[%s7263_s4 + $0x50] sm:$0xff] (!%p467_p9)   ;;  %s4673_s27 = sshll.u32 (!%p467_p9), %s513_s23, 4  ;;  %s7218_s17 = scalar_lea.sflag (!%p467_p9), [#allocation3], %s513_s23 }
  0x18   : > { %v5768_v40 = vld [vmem:[%s7263_s4 + $0x60] sm:$0xff] (!%p467_p9)   ;;  %v5772_v45 = vld [vmem:[%s7263_s4 + $0x70] sm:$0xff] (!%p467_p9)   ;;  %v5773_v46 = vld [vmem:[%s7263_s4 + $0x58] sm:$0xff] (!%p467_p9)   ;;  %s6078_s25 = smov (!%p467_p9), [#allocation2]  }
  0x19   : > { %5274 = vmatpush3.bf16.msra.mxu0 (!%p467_p9), %v5761_v17  ;;  %5286 = vmatpush3.bf16.msra.mxu1 (!%p467_p9), %v5762_v18  ;;  %v5774_v47 = vld [vmem:[%s7263_s4 + $0x78] sm:$0xff] (!%p467_p9)   ;;  %v5775_v48 = vld [vmem:[%s7263_s4 + $0x80] sm:$0xff] (!%p467_p9)   ;;  %v5777_v50 = vld [vmem:[%s7263_s4 + $0x88] sm:$0xff] (!%p467_p9)  }
  0x1a   : > { %5275 = vmatprep.subr.bf16.mxu0 (!%p467_p9), %v6075_v16  ;;  %5287 = vmatprep.subr.bf16.mxu1 (!%p467_p9), %v6075_v16  ;;  %v5776_v49 = vld [vmem:[%s7263_s4 + $0xa0] sm:$0xff] (!%p467_p9)   ;;  %v5778_v51 = vld [vmem:[%s7263_s4 + $0xa8] sm:$0xff] (!%p467_p9)   ;;  %v5779_v52 = vld [vmem:[%s7263_s4 + $0x90] sm:$0xff] (!%p467_p9)  }
  0x1b   : > { %s7297_s18 = smov (!%p517_p10, %s4674_s18), 3  ;;  %v5780_v53 = vld [vmem:[%s7263_s4 + $0xb0] sm:$0xff]   ;;  %v5781_v54 = vld [vmem:[%s7263_s4 + $0x98] sm:$0xff]   ;;  %v5783_v56 = vld [vmem:[%s7263_s4 + $0xc0] sm:$0xff]  }
  0x1c   : > { %s4675_s19 = sshll.u32 %s7297_s18, 3  ;;  %v5782_v55 = vld [vmem:[%s7263_s4 + $0xb8] sm:$0xff]   ;;  %v5784_v57 = vld [vmem:[%s7263_s4 + $0xe0] sm:$0xff]   ;;  %v5785_v58 = vld [vmem:[%s7263_s4 + $0xc8] sm:$0xff]   ;;  %s7216_s18 = scalar_lea.hbm %s7275_s16, %s5053_s26 }
  0x1d   : > { %s6218_s29 = scalar_lea.vmem %s7288_s28, %s4675_s19  ;;  %5276 = vmatpush3.bf16.msra.mxu0 %v5763_v19  ;;  %5288 = vmatpush3.bf16.msra.mxu1 %v5764_v20  ;;  %v5786_v59 = vld [vmem:[%s7263_s4 + $0xe8] sm:$0xff]   ;;  %v5787_v60 = vld [vmem:[%s7263_s4 + $0xd0] sm:$0xff]   ;;  %v5789_v62 = vld [vmem:[%s7263_s4 + $0xd8] sm:$0xff]  }
  0x1e   : > { %v524_v0 = vld [vmem:[%s6218_s29] sm:$0xff]  ;;  %v525_v1 = vld [vmem:[%s6218_s29 + $0x8] sm:$0xff]  ;;  %5277 = vmatprep.subr.bf16.mxu0 %v6075_v16  ;;  %5289 = vmatprep.subr.bf16.mxu1 %v6075_v16  ;;  %v5788_v61 = vld [vmem:[%s7263_s4 + $0xf0] sm:$0xff]  }
  0x1f   : > { %v531_v2 = vsel %vm530_vm0, %v524_v0, 0.0  ;;  %v534_v3 = vsel %vm530_vm0, %v525_v1, 0.0  ;;  %v5790_v63 = vld [vmem:[%s7263_s4 + $0xf8] sm:$0xff]  }
  0x20   : > { %532 = vadd.xlane.f32.xlu0 %v531_v2  ;;  %v5793_v2 = vld [vmem:[%s7263_s4 + $0x108] sm:$0xff]   ;;  %v5805_v14 = vld [vmem:[%s7263_s4 + $0x158] sm:$0xff]  }
  0x21   : > { %5278 = vmatpush3.bf16.msra.mxu0 %v5765_v21  ;;  %5290 = vmatpush3.bf16.msra.mxu1 %v5766_v22  ;;  %v5806_v15 = vld [vmem:[%s7263_s4 + $0x178] sm:$0xff]  }
  0x22   : > { %5295 = vmatprep.subr.bf16.mxu0 %v6075_v16  ;;  %5307 = vmatprep.subr.bf16.mxu1 %v6075_v16 }
  0x24   : > { %535 = vadd.xlane.f32.xlu0 %v534_v3  ;;  %v5794_v3 = vld [vmem:[%s7263_s4 + $0x128] sm:$0xff]  }
  0xad   : > { %v533_v4 = vpop.xlane.xlu0 %532 }
  0xae   : > { %v538_v5 = vmul.f32 0.015625, %v533_v4  ;;  %v5795_v4 = vld [vmem:[%s7263_s4 + $0x110] sm:$0xff]  }
  0xb0   : > { %v540_v6 = vsub.f32 %v524_v0, %v538_v5  ;;  %v5791_v0 = vld [vmem:[%s7263_s4 + $0x100] sm:$0xff]   ;;  %v5796_v5 = vld [vmem:[%s7263_s4 + $0x130] sm:$0xff]  }
  0xb1   : > { %v536_v7 = vpop.xlane.xlu0 %535 }
  0xb2   : > { %v539_v8 = vmul.f32 0.015625, %v536_v7  ;;  %v542_v9 = vmul.f32 %v540_v6, %v540_v6  ;;  %v5798_v7 = vld [vmem:[%s7263_s4 + $0x138] sm:$0xff]  }
  0xb4   : > { %v541_v10 = vsub.f32 %v525_v1, %v539_v8  ;;  %v544_v11 = vsel %vm530_vm0, %v542_v9, 0.0  ;;  %v5792_v1 = vld [vmem:[%s7263_s4 + $0x120] sm:$0xff]  }
  0xb5   : > { %545 = vadd.xlane.f32.xlu1 %v544_v11  ;;  %v5799_v8 = vld [vmem:[%s7263_s4 + $0x140] sm:$0xff]   ;;  %v5802_v11 = vld [vmem:[%s7263_s4 + $0x168] sm:$0xff]  }
  0xb6   : > { %v543_v12 = vmul.f32 %v541_v10, %v541_v10  ;;  %v5800_v9 = vld [vmem:[%s7263_s4 + $0x160] sm:$0xff]  }
  0xb8   : > { %v547_v13 = vsel %vm530_vm0, %v543_v12, 0.0  ;;  %v5803_v12 = vld [vmem:[%s7263_s4 + $0x150] sm:$0xff]  }
  0xb9   : > { %548 = vadd.xlane.f32.xlu1 %v547_v13  ;;  %v5804_v13 = vld [vmem:[%s7263_s4 + $0x170] sm:$0xff]  }
 0x142   : > { %v546_v23 = vpop.xlane.xlu1 %545 }
 0x143   : > { %v550_v24 = vmul.f32 0.015625, %v546_v23 }
 0x145   : > { %v552_v25 = vadd.f32 1e-05, %v550_v24 }
 0x146   : > { %v549_v26 = vpop.xlane.xlu1 %548 }
 0x147   : > { %5923 = vrsqrt.f32 %v552_v25  ;;  %v551_v27 = vmul.f32 0.015625, %v549_v26 }
 0x149   : > { %v553_v28 = vadd.f32 1e-05, %v551_v27 }
 0x14b   : > { %5925 = vrsqrt.f32 %v553_v28 }
 0x151   : > { %v5924_v29 = vpop.eup %5923 }
 0x152   : > { %v556_v30 = vmul.f32 %v5924_v29, %v540_v6  ;;  %v5797_v6 = vld [vmem:[%s7263_s4 + $0x118] sm:$0xff]  }
 0x154   : > { %v564_v33 = vmul.f32 %v4676_v31, %v556_v30 }
 0x155   : > { %v5926_v32 = vpop.eup %5925 }
 0x156   : > { %v557_v34 = vmul.f32 %v5926_v32, %v541_v10  ;;  %v572_v37 = vadd.f32 %v4677_v35, %v564_v33  ;;  %v5801_v10 = vld [vmem:[%s7263_s4 + $0x148] sm:$0xff]  }
 0x158   : > { %v565_v36 = vmul.f32 %v4676_v31, %v557_v34 }
 0x15a   : > { %v573_v38 = vadd.f32 %v4677_v35, %v565_v36 }
 0x15c   : > { %v6276_v41 = vpack.c.bf16 %v573_v38, %v572_v37 }
 0x15e   : > { %5280 = vmatmul.mubr.msk.bf16.vlgmr.msra.gmra.mrb[0].mxu0 %vm530_vm0, %v6276_v41  ;;  %5292 = vmatmul.mubr.msk.bf16.vlgmr.msra.gmra.mrb[0].mxu1 %vm530_vm0, %v6276_v41 }
 0x15f   : > { %5296 = vmatpush3.bf16.msra.mxu0 %v5767_v39  ;;  %5308 = vmatpush3.bf16.msra.mxu1 %v5768_v40 }
 0x160   : > { %5297 = vmatprep.subr.bf16.mxu0 %v6075_v16  ;;  %5309 = vmatprep.subr.bf16.mxu1 %v6075_v16 }
 0x161   : > { %5303 = vmatprep.mubr.msk.bf16.mxu0 %vm6076_vm1, %v6075_v16  ;;  %5315 = vmatprep.mubr.msk.bf16.mxu1 %vm6076_vm1, %v6075_v16 }
 0x163   : > { %5298 = vmatpush3.bf16.msra.mxu0 %v5769_v42  ;;  %5310 = vmatpush3.bf16.msra.mxu1 %v5770_v43 }
 0x164   : > { %5299 = vmatprep.subr.bf16.mxu0 %v6075_v16  ;;  %5311 = vmatprep.subr.bf16.mxu1 %v6075_v16 }
 0x167   : > { %5300 = vmatpush3.bf16.msra.mxu0 %v5771_v44  ;;  %5312 = vmatpush3.bf16.msra.mxu1 %v5772_v45 }
 0x168   : > { %5301 = vmatprep.subr.bf16.mxu0 %v6075_v16  ;;  %5313 = vmatprep.subr.bf16.mxu1 %v6075_v16 }
 0x16b   : > { %5302 = vmatpush3.bf16.msra.mxu0 %v5773_v46  ;;  %5314 = vmatpush3.bf16.msra.mxu1 %v5774_v47 }
 0x16c   : > { %5319 = vmatprep.subr.bf16.mxu0 %v6075_v16  ;;  %5331 = vmatprep.subr.bf16.mxu1 %v6075_v16 }
 0x16e   : > { %5304 = vmatmul.mubr.msk.bf16.vlgmr.msra.gmra.mrb[4].mxu0 %vm530_vm0, %v6276_v41  ;;  %5316 = vmatmul.mubr.msk.bf16.vlgmr.msra.gmra.mrb[4].mxu1 %vm530_vm0, %v6276_v41 }
 0x16f   : > { %5320 = vmatpush3.bf16.msra.mxu0 %v5775_v48  ;;  %5332 = vmatpush3.bf16.msra.mxu1 %v5776_v49 }
 0x170   : > { %5321 = vmatprep.subr.bf16.mxu0 %v6075_v16  ;;  %5333 = vmatprep.subr.bf16.mxu1 %v6075_v16 }
 0x171   : > { %5327 = vmatprep.mubr.msk.bf16.mxu0 %vm6076_vm1, %v6075_v16  ;;  %5339 = vmatprep.mubr.msk.bf16.mxu1 %vm6076_vm1, %v6075_v16 }
 0x173   : > { %5322 = vmatpush3.bf16.msra.mxu0 %v5777_v50  ;;  %5334 = vmatpush3.bf16.msra.mxu1 %v5778_v51 }
 0x174   : > { %5323 = vmatprep.subr.bf16.mxu0 %v6075_v16  ;;  %5335 = vmatprep.subr.bf16.mxu1 %v6075_v16 }
 0x177   : > { %5324 = vmatpush3.bf16.msra.mxu0 %v5779_v52  ;;  %5336 = vmatpush3.bf16.msra.mxu1 %v5780_v53 }
 0x178   : > { %5325 = vmatprep.subr.bf16.mxu0 %v6075_v16  ;;  %5337 = vmatprep.subr.bf16.mxu1 %v6075_v16 }
 0x17b   : > { %5326 = vmatpush3.bf16.msra.mxu0 %v5781_v54  ;;  %5338 = vmatpush3.bf16.msra.mxu1 %v5782_v55 }
 0x17c   : > { %5343 = vmatprep.subr.bf16.mxu0 %v6075_v16  ;;  %5355 = vmatprep.subr.bf16.mxu1 %v6075_v16 }
 0x17e   : > { %5328 = vmatmul.mubr.msk.bf16.vlgmr.msra.gmra.mrb[8].mxu0 %vm530_vm0, %v6276_v41  ;;  %5340 = vmatmul.mubr.msk.bf16.vlgmr.msra.gmra.mrb[8].mxu1 %vm530_vm0, %v6276_v41 }
 0x17f   : > { %5344 = vmatpush3.bf16.msra.mxu0 %v5783_v56  ;;  %5356 = vmatpush3.bf16.msra.mxu1 %v5784_v57 }
 0x180   : > { %5345 = vmatprep.subr.bf16.mxu0 %v6075_v16  ;;  %5357 = vmatprep.subr.bf16.mxu1 %v6075_v16 }
 0x181   : > { %5351 = vmatprep.mubr.msk.bf16.mxu0 %vm6076_vm1, %v6075_v16  ;;  %5363 = vmatprep.mubr.msk.bf16.mxu1 %vm6076_vm1, %v6075_v16 }
 0x183   : > { %5346 = vmatpush3.bf16.msra.mxu0 %v5785_v58  ;;  %5358 = vmatpush3.bf16.msra.mxu1 %v5786_v59 }
 0x184   : > { %5347 = vmatprep.subr.bf16.mxu0 %v6075_v16  ;;  %5359 = vmatprep.subr.bf16.mxu1 %v6075_v16 }
 0x187   : > { %5348 = vmatpush3.bf16.msra.mxu0 %v5787_v60  ;;  %5360 = vmatpush3.bf16.msra.mxu1 %v5788_v61 }
 0x188   : > { %5349 = vmatprep.subr.bf16.mxu0 %v6075_v16  ;;  %5361 = vmatprep.subr.bf16.mxu1 %v6075_v16 }
 0x18b   : > { %5350 = vmatpush3.bf16.msra.mxu0 %v5789_v62  ;;  %5362 = vmatpush3.bf16.msra.mxu1 %v5790_v63 }
 0x18c   : > { %5367 = vmatprep.subr.bf16.mxu0 %v6075_v16  ;;  %5379 = vmatprep.subr.bf16.mxu1 %v6075_v16 }
 0x18e   : > { %5352 = vmatmul.mubr.msk.bf16.vlgmr.msra.gmra.mrb[12].mxu0 %vm530_vm0, %v6276_v41  ;;  %5364 = vmatmul.mubr.msk.bf16.vlgmr.msra.gmra.mrb[12].mxu1 %vm530_vm0, %v6276_v41 }
 0x18f   : > { %5368 = vmatpush3.bf16.msra.mxu0 %v5791_v0  ;;  %5380 = vmatpush3.bf16.msra.mxu1 %v5792_v1 }
 0x190   : > { %5369 = vmatprep.subr.bf16.mxu0 %v6075_v16  ;;  %5381 = vmatprep.subr.bf16.mxu1 %v6075_v16 }
 0x191   : > { %5375 = vmatprep.mubr.msk.bf16.mxu0 %vm6076_vm1, %v6075_v16  ;;  %5387 = vmatprep.mubr.msk.bf16.mxu1 %vm6076_vm1, %v6075_v16 }
 0x193   : > { %5370 = vmatpush3.bf16.msra.mxu0 %v5793_v2  ;;  %5382 = vmatpush3.bf16.msra.mxu1 %v5794_v3 }
 0x194   : > { %5371 = vmatprep.subr.bf16.mxu0 %v6075_v16  ;;  %5383 = vmatprep.subr.bf16.mxu1 %v6075_v16 }
 0x197   : > { %5372 = vmatpush3.bf16.msra.mxu0 %v5795_v4  ;;  %5384 = vmatpush3.bf16.msra.mxu1 %v5796_v5 }
 0x198   : > { %5373 = vmatprep.subr.bf16.mxu0 %v6075_v16  ;;  %5385 = vmatprep.subr.bf16.mxu1 %v6075_v16 }
 0x19b   : > { %5374 = vmatpush3.bf16.msra.mxu0 %v5797_v6  ;;  %5386 = vmatpush3.bf16.msra.mxu1 %v5798_v7 }
 0x19c   : > { %5391 = vmatprep.subr.bf16.mxu0 %v6075_v16  ;;  %5403 = vmatprep.subr.bf16.mxu1 %v6075_v16 }
 0x19e   : > { %5376 = vmatmul.mubr.msk.bf16.vlgmr.msra.gmra.mrb[16].mxu0 %vm530_vm0, %v6276_v41  ;;  %5388 = vmatmul.mubr.msk.bf16.vlgmr.msra.gmra.mrb[16].mxu1 %vm530_vm0, %v6276_v41 }
 0x19f   : > { %5392 = vmatpush3.bf16.msra.mxu0 %v5799_v8  ;;  %5404 = vmatpush3.bf16.msra.mxu1 %v5800_v9 }
 0x1a0   : > { %5393 = vmatprep.subr.bf16.mxu0 %v6075_v16  ;;  %5405 = vmatprep.subr.bf16.mxu1 %v6075_v16 }
 0x1a1   : > { %5399 = vmatprep.mubr.msk.bf16.mxu0 %vm6076_vm1, %v6075_v16  ;;  %5411 = vmatprep.mubr.msk.bf16.mxu1 %vm6076_vm1, %v6075_v16 }
 0x1a3   : > { %5394 = vmatpush3.bf16.msra.mxu0 %v5801_v10  ;;  %5406 = vmatpush3.bf16.msra.mxu1 %v5802_v11 }
 0x1a4   : > { %5395 = vmatprep.subr.bf16.mxu0 %v6075_v16  ;;  %5407 = vmatprep.subr.bf16.mxu1 %v6075_v16 }
 0x1a7   : > { %5396 = vmatpush3.bf16.msra.mxu0 %v5803_v12  ;;  %5408 = vmatpush3.bf16.msra.mxu1 %v5804_v13 }
 0x1a8   : > { %5397 = vmatprep.subr.bf16.mxu0 %v6075_v16  ;;  %5409 = vmatprep.subr.bf16.mxu1 %v6075_v16 }
 0x1ab   : > { %5398 = vmatpush3.bf16.msra.mxu0 %v5805_v14  ;;  %5410 = vmatpush3.bf16.msra.mxu1 %v5806_v15 }
 0x1ac   : > { %5415 = vmatprep.subr.bf16.mxu0 %v6075_v16  ;;  %5421 = vmatprep.subr.bf16.mxu1 %v6075_v16 }
 0x1ae   : > { %5400 = vmatmul.mubr.msk.bf16.vlgmr.msra.gmra.mrb[20].mxu0 %vm530_vm0, %v6276_v41  ;;  %5412 = vmatmul.mubr.msk.bf16.vlgmr.msra.gmra.mrb[20].mxu1 %vm530_vm0, %v6276_v41 }
 0x1af   : > { %5417 = vmatprep.mubr.msk.bf16.mxu0 %vm6076_vm1, %v6075_v16  ;;  %5423 = vmatprep.mubr.msk.bf16.mxu1 %vm6076_vm1, %v6075_v16 }
 0x231   : > { %v732_v17 = vpop.f32.mrb[0].mxu0  ;;  %v797_v18 = vpop.f32.mrb[0].mxu1 }
 0x232   : > { %v5281_v19 = vpop.f32.mrb[1].mxu0  ;;  %v5293_v20 = vpop.f32.mrb[1].mxu1 }
 0x233   : > { %v735_v21 = vpop.f32.mrb[2].mxu0  ;;  %v800_v22 = vpop.f32.mrb[2].mxu1 }
 0x234   : > { %v1454_v23 = vpack.c.bf16 %v735_v21, %v732_v17  ;;  %v1455_v24 = vpack.c.bf16 %v800_v22, %v797_v18  ;;  %v5282_v25 = vpop.f32.mrb[3].mxu0  ;;  %v5294_v26 = vpop.f32.mrb[3].mxu1  ;;  %v526_v18 = vld [vmem:[%s7289_s1] sm:$0xff]  ;;  %v527_v21 = vld [vmem:[%s7289_s1 + $0x8] sm:$0xff] }
 0x241   : > { %v862_v27 = vpop.f32.mrb[4].mxu0  ;;  %v927_v28 = vpop.f32.mrb[4].mxu1 }
 0x242   : > { %v5305_v29 = vpop.f32.mrb[5].mxu0  ;;  %v5317_v30 = vpop.f32.mrb[5].mxu1 }
 0x243   : > { %v865_v31 = vpop.f32.mrb[6].mxu0  ;;  %v930_v32 = vpop.f32.mrb[6].mxu1 }
 0x244   : > { %v1456_v33 = vpack.c.bf16 %v865_v31, %v862_v27  ;;  %v1457_v34 = vpack.c.bf16 %v930_v32, %v927_v28  ;;  %v5306_v35 = vpop.f32.mrb[7].mxu0  ;;  %v5318_v36 = vpop.f32.mrb[7].mxu1 }
 0x251   : > { %v992_v37 = vpop.f32.mrb[8].mxu0  ;;  %v1057_v38 = vpop.f32.mrb[8].mxu1 }
 0x252   : > { %v5329_v39 = vpop.f32.mrb[9].mxu0  ;;  %v5341_v40 = vpop.f32.mrb[9].mxu1 }
 0x253   : > { %v995_v41 = vpop.f32.mrb[10].mxu0  ;;  %v1060_v42 = vpop.f32.mrb[10].mxu1 }
 0x254   : > { %v1458_v43 = vpack.c.bf16 %v995_v41, %v992_v37  ;;  %v1459_v44 = vpack.c.bf16 %v1060_v42, %v1057_v38  ;;  %v5330_v45 = vpop.f32.mrb[11].mxu0  ;;  %v5342_v46 = vpop.f32.mrb[11].mxu1 }
 0x256   : > { %v1467_v47 = vsel %vm1462_vm2, %v1458_v43, 0  ;;  %v1514_v48 = vsel %vm1462_vm2, %v1459_v44, 0 }
 0x257   : > { %5416 = vmatpush3.bf16.xpose.msra.mxu0 %v1467_v47  ;;  %5422 = vmatpush3.bf16.xpose.msra.mxu1 %v1514_v48 }
 0x258   : > { %5427 = vmatprep.subr.bf16.mxu0 %v6075_v16  ;;  %5433 = vmatprep.subr.bf16.mxu1 %v6075_v16 }
 0x25e   : > { %5418 = vmatmul.mubr.msk.bf16.vlgmr.msra.gmra.mrb[24].mxu0 %vm1462_vm2, %v1454_v23  ;;  %5424 = vmatmul.mubr.msk.bf16.vlgmr.msra.gmra.mrb[24].mxu1 %vm1462_vm2, %v1455_v24 }
 0x25f   : > { %5429 = vmatprep.mubr.msk.bf16.mxu0 %vm6076_vm1, %v6075_v16  ;;  %5435 = vmatprep.mubr.msk.bf16.mxu1 %vm6076_vm1, %v6075_v16 }
 0x261   : > { %v1122_v49 = vpop.f32.mrb[12].mxu0  ;;  %v1187_v50 = vpop.f32.mrb[12].mxu1 }
 0x262   : > { %v5353_v51 = vpop.f32.mrb[13].mxu0  ;;  %v5365_v52 = vpop.f32.mrb[13].mxu1 }
 0x263   : > { %v1125_v53 = vpop.f32.mrb[14].mxu0  ;;  %v1190_v54 = vpop.f32.mrb[14].mxu1 }
 0x264   : > { %v1460_v55 = vpack.c.bf16 %v1125_v53, %v1122_v49  ;;  %v1461_v56 = vpack.c.bf16 %v1190_v54, %v1187_v50  ;;  %v5354_v57 = vpop.f32.mrb[15].mxu0  ;;  %v5366_v58 = vpop.f32.mrb[15].mxu1 }
 0x266   : > { %v1561_v59 = vsel %vm1462_vm2, %v1460_v55, 0  ;;  %v1608_v60 = vsel %vm1462_vm2, %v1461_v56, 0 }
 0x267   : > { %5428 = vmatpush3.bf16.xpose.msra.mxu0 %v1561_v59  ;;  %5434 = vmatpush3.bf16.xpose.msra.mxu1 %v1608_v60 }
 0x268   : > { %5439 = vmatprep.subr.bf16.mxu0 %v6075_v16  ;;  %5445 = vmatprep.subr.bf16.mxu1 %v6075_v16 }
 0x26e   : > { %5430 = vmatmul.mubr.msk.bf16.vlgmr.msra.gmra.mrb[28].mxu0 %vm1462_vm2, %v1456_v33  ;;  %5436 = vmatmul.mubr.msk.bf16.vlgmr.msra.gmra.mrb[28].mxu1 %vm1462_vm2, %v1457_v34 }
 0x26f   : > { %5441 = vmatprep.mubr.msk.bf16.mxu0 %vm6076_vm1, %v6075_v16  ;;  %5447 = vmatprep.mubr.msk.bf16.mxu1 %vm6076_vm1, %v6075_v16 }
 0x271   : > { %v1252_v61 = vpop.f32.mrb[16].mxu0  ;;  %v1317_v62 = vpop.f32.mrb[16].mxu1 }
 0x272   : > { %v5377_v63 = vpop.f32.mrb[17].mxu0  ;;  %v5389_v0 = vpop.f32.mrb[17].mxu1 }
 0x273   : > { %v1255_v1 = vpop.f32.mrb[18].mxu0  ;;  %v1320_v2 = vpop.f32.mrb[18].mxu1 }
 0x274   : > { %v1743_v3 = vpack.c.bf16 %v1255_v1, %v1252_v61  ;;  %v1744_v4 = vpack.c.bf16 %v1320_v2, %v1317_v62  ;;  %v5378_v5 = vpop.f32.mrb[19].mxu0  ;;  %v5390_v6 = vpop.f32.mrb[19].mxu1 }
 0x276   : > { %5440 = vmatpush3.bf16.msra.mxu0 %v1743_v3  ;;  %5446 = vmatpush3.bf16.msra.mxu1 %v1744_v4 }
 0x277   : > { %5451 = vmatprep.subr.bf16.mxu0 %v6075_v16  ;;  %5457 = vmatprep.subr.bf16.mxu1 %v6075_v16 }
 0x281   : > { %v6502_v7 = vpop.f32.mrb[20].mxu0  ;;  %v6504_v8 = vpop.f32.mrb[20].mxu1 }
 0x282   : > { %v5401_v9 = vpop.f32.mrb[21].mxu0  ;;  %v5413_v10 = vpop.f32.mrb[21].mxu1 }
 0x283   : > { %v6506_v11 = vpop.f32.mrb[22].mxu0  ;;  %v6508_v12 = vpop.f32.mrb[22].mxu1 }
 0x284   : > { %v1745_v13 = vpack.c.bf16 %v6506_v11, %v6502_v7  ;;  %v1746_v14 = vpack.c.bf16 %v6508_v12, %v6504_v8  ;;  %v5402_v15 = vpop.f32.mrb[23].mxu0  ;;  %v5414_v17 = vpop.f32.mrb[23].mxu1  ;;  %v5807_v12 = vld [vmem:[%s7264_s5] sm:$0xff]  }
 0x331   : > { %v1503_v19 = vpop.f32.mrb[24].mxu0  ;;  %v1550_v20 = vpop.f32.mrb[24].mxu1 }
 0x332   : > { %v1504_v22 = vadd.f32 %v1503_v19, %v526_v18  ;;  %v5419_v23 = vpop.f32.mrb[25].mxu0  ;;  %v5425_v24 = vpop.f32.mrb[25].mxu1  ;;  %v1551_v27 = vadd.f32 %v1550_v20, %v526_v18 }
 0x333   : > { %v1506_v25 = vpop.f32.mrb[26].mxu0  ;;  %v1553_v26 = vpop.f32.mrb[26].mxu1 }
 0x334   : > { %v1507_v28 = vadd.f32 %v1506_v25, %v527_v21  ;;  %v5420_v29 = vpop.f32.mrb[27].mxu0  ;;  %v5426_v30 = vpop.f32.mrb[27].mxu1  ;;  %v1651_v31 = vsel %vm1462_vm2, %v1504_v22, -inf  ;;  %v1554_v32 = vadd.f32 %v1553_v26, %v527_v21  ;;  %v1657_v34 = vsel %vm1462_vm2, %v1551_v27, -inf }
 0x335   : > { %1652 = vmax.xlane.f32.xlu0 %v1651_v31 }
 0x336   : > { %v1654_v33 = vsel %vm1462_vm2, %v1507_v28, -inf  ;;  %v1660_v35 = vsel %vm1462_vm2, %v1554_v32, -inf }
 0x337   : > { %1655 = vmax.xlane.f32.xlu1 %v1654_v33 }
 0x339   : > { %1658 = vmax.xlane.f32.xlu0 %v1657_v34 }
 0x33b   : > { %1661 = vmax.xlane.f32.xlu1 %v1660_v35 }
 0x341   : > { %v1597_v36 = vpop.f32.mrb[28].mxu0  ;;  %v1644_v37 = vpop.f32.mrb[28].mxu1 }
 0x342   : > { %v1598_v38 = vadd.f32 %v1597_v36, %v526_v18  ;;  %v5431_v39 = vpop.f32.mrb[29].mxu0  ;;  %v5437_v40 = vpop.f32.mrb[29].mxu1  ;;  %v1645_v43 = vadd.f32 %v1644_v37, %v526_v18 }
 0x343   : > { %v1600_v41 = vpop.f32.mrb[30].mxu0  ;;  %v1647_v42 = vpop.f32.mrb[30].mxu1 }
 0x344   : > { %v1601_v44 = vadd.f32 %v1600_v41, %v527_v21  ;;  %v5432_v45 = vpop.f32.mrb[31].mxu0  ;;  %v5438_v46 = vpop.f32.mrb[31].mxu1  ;;  %v1663_v47 = vsel %vm1462_vm2, %v1598_v38, -inf  ;;  %v1648_v48 = vadd.f32 %v1647_v42, %v527_v21  ;;  %v1669_v50 = vsel %vm1462_vm2, %v1645_v43, -inf }
 0x345   : > { %1664 = vmax.xlane.f32.xlu0 %v1663_v47 }
 0x346   : > { %v1666_v49 = vsel %vm1462_vm2, %v1601_v44, -inf  ;;  %v1672_v51 = vsel %vm1462_vm2, %v1648_v48, -inf }
 0x347   : > { %1667 = vmax.xlane.f32.xlu1 %v1666_v49 }
 0x349   : > { %1670 = vmax.xlane.f32.xlu0 %v1669_v50 }
 0x34b   : > { %1673 = vmax.xlane.f32.xlu1 %v1672_v51 }
 0x3c2   : > { %v1653_v52 = vpop.xlane.xlu0 %1652 }
 0x3c3   : > { %v1675_v53 = vsub.f32 %v1504_v22, %v1653_v52 }
 0x3c4   : > { %v1656_v54 = vpop.xlane.xlu1 %1655 }
 0x3c5   : > { %v1683_v55 = vmul.f32 1.442695, %v1675_v53  ;;  %v1676_v56 = vsub.f32 %v1507_v28, %v1656_v54 }
 0x3c6   : > { %v1659_v57 = vpop.xlane.xlu0 %1658 }
 0x3c7   : > { %5927 = vpow2.f32 %v1683_v55  ;;  %v1685_v58 = vmul.f32 1.442695, %v1676_v56  ;;  %v1677_v59 = vsub.f32 %v1551_v27, %v1659_v57 }
 0x3c8   : > { %v1662_v60 = vpop.xlane.xlu1 %1661 }
 0x3c9   : > { %5929 = vpow2.f32 %v1685_v58  ;;  %v1687_v61 = vmul.f32 1.442695, %v1677_v59  ;;  %v1678_v62 = vsub.f32 %v1554_v32, %v1662_v60 }
 0x3cb   : > { %5931 = vpow2.f32 %v1687_v61  ;;  %v1689_v63 = vmul.f32 1.442695, %v1678_v62  ;;  %v5809_v62 = vld [vmem:[%s7264_s5 + $0x10] sm:$0xff]  }
 0x3cd   : > { %5933 = vpow2.f32 %v1689_v63 }
 0x3d1   : > { %v5928_v0 = vpop.eup %5927 }
 0x3d2   : > { %v1665_v1 = vpop.xlane.xlu0 %1664  ;;  %v1699_v2 = vsel %vm1462_vm2, %v5928_v0, 0.0 }
 0x3d3   : > { %v5930_v3 = vpop.eup %5929  ;;  %v1679_v4 = vsub.f32 %v1598_v38, %v1665_v1  ;;  %1700 = vadd.xlane.f32.xlu0 %v1699_v2 }
 0x3d4   : > { %v1668_v5 = vpop.xlane.xlu1 %1667  ;;  %v1702_v6 = vsel %vm1462_vm2, %v5930_v3, 0.0 }
 0x3d5   : > { %v5932_v9 = vpop.eup %5931  ;;  %v1691_v10 = vmul.f32 1.442695, %v1679_v4  ;;  %v1680_v15 = vsub.f32 %v1601_v44, %v1668_v5  ;;  %1703 = vadd.xlane.f32.xlu1 %v1702_v6  ;;  %v5810_v4 = vld [vmem:[%s7264_s5 + $0x18] sm:$0xff]  }
 0x3d6   : > { %v1671_v17 = vpop.xlane.xlu0 %1670  ;;  %v1705_v18 = vsel %vm1462_vm2, %v5932_v9, 0.0 }
 0x3d7   : > { %v5934_v19 = vpop.eup %5933  ;;  %5935 = vpow2.f32 %v1691_v10  ;;  %v1693_v20 = vmul.f32 1.442695, %v1680_v15  ;;  %v1681_v21 = vsub.f32 %v1645_v43, %v1671_v17  ;;  %1706 = vadd.xlane.f32.xlu0 %v1705_v18 }
 0x3d8   : > { %v1674_v22 = vpop.xlane.xlu1 %1673  ;;  %v1708_v23 = vsel %vm1462_vm2, %v5934_v19, 0.0 }
 0x3d9   : > { %5937 = vpow2.f32 %v1693_v20  ;;  %v1695_v24 = vmul.f32 1.442695, %v1681_v21  ;;  %v1682_v25 = vsub.f32 %v1648_v48, %v1674_v22  ;;  %1709 = vadd.xlane.f32.xlu1 %v1708_v23 }
 0x3db   : > { %5939 = vpow2.f32 %v1695_v24  ;;  %v1697_v26 = vmul.f32 1.442695, %v1682_v25 }
 0x3dd   : > { %5941 = vpow2.f32 %v1697_v26 }
 0x3e1   : > { %v5936_v27 = vpop.eup %5935 }
 0x3e2   : > { %v1711_v28 = vsel %vm1462_vm2, %v5936_v27, 0.0 }
 0x3e3   : > { %v5938_v29 = vpop.eup %5937  ;;  %1712 = vadd.xlane.f32.xlu0 %v1711_v28 }
 0x3e4   : > { %v1714_v30 = vsel %vm1462_vm2, %v5938_v29, 0.0 }
 0x3e5   : > { %v5940_v31 = vpop.eup %5939  ;;  %1715 = vadd.xlane.f32.xlu1 %v1714_v30 }
 0x3e6   : > { %v1717_v32 = vsel %vm1462_vm2, %v5940_v31, 0.0 }
 0x3e7   : > { %v5942_v33 = vpop.eup %5941  ;;  %1718 = vadd.xlane.f32.xlu0 %v1717_v32 }
 0x3e8   : > { %v1720_v34 = vsel %vm1462_vm2, %v5942_v33, 0.0 }
 0x3e9   : > { %1721 = vadd.xlane.f32.xlu1 %v1720_v34 }
 0x460   : > { %v1701_v35 = vpop.xlane.xlu0 %1700 }
 0x461   : > { %5943 = vrcp.f32 %v1701_v35 }
 0x462   : > { %v1704_v36 = vpop.xlane.xlu1 %1703 }
 0x463   : > { %5945 = vrcp.f32 %v1704_v36 }
 0x464   : > { %v1707_v37 = vpop.xlane.xlu0 %1706 }
 0x465   : > { %5947 = vrcp.f32 %v1707_v37 }
 0x466   : > { %v1710_v38 = vpop.xlane.xlu1 %1709 }
 0x467   : > { %5949 = vrcp.f32 %v1710_v38 }
 0x46b   : > { %v5944_v39 = vpop.eup %5943 }
 0x46c   : > { %v1731_v41 = vmul.f32 %v5944_v39, %v5928_v0 }
 0x46d   : > { %v5946_v40 = vpop.eup %5945 }
 0x46e   : > { %v1732_v42 = vmul.f32 %v5946_v40, %v5930_v3 }
 0x46f   : > { %v5948_v43 = vpop.eup %5947 }
 0x470   : > { %v1713_v44 = vpop.xlane.xlu0 %1712  ;;  %v1739_v45 = vpack.c.bf16 %v1732_v42, %v1731_v41  ;;  %v1733_v47 = vmul.f32 %v5948_v43, %v5932_v9 }
 0x471   : > { %v5950_v46 = vpop.eup %5949  ;;  %5951 = vrcp.f32 %v1713_v44 }
 0x472   : > { %v1734_v48 = vmul.f32 %v5950_v46, %v5934_v19  ;;  %5442 = vmatmul.mubr.msk.bf16.vlgmr.msra.gmra.mrb[32].mxu0 %vm1462_vm2, %v1739_v45  ;;  %v1716_v49 = vpop.xlane.xlu1 %1715 }
 0x473   : > { %5452 = vmatpush3.bf16.msra.mxu0 %v1745_v13  ;;  %5953 = vrcp.f32 %v1716_v49  ;;  %5453 = vmatprep.mubr.msk.bf16.mxu0 %vm6076_vm1, %v6075_v16 }
 0x474   : > { %v1719_v50 = vpop.xlane.xlu0 %1718  ;;  %v1740_v51 = vpack.c.bf16 %v1734_v48, %v1733_v47  ;;  %5463 = vmatprep.subr.bf16.mxu0 %v6075_v16  ;;  %v4754_v48 = vld [vmem:[%s7265_s6] ss:$0 sm:$0xff] }
 0x475   : > { %5955 = vrcp.f32 %v1719_v50 }
 0x476   : > { %5448 = vmatmul.mubr.msk.bf16.vlgmr.msra.gmra.mrb[32].mxu1 %vm1462_vm2, %v1740_v51  ;;  %v1722_v52 = vpop.xlane.xlu1 %1721 }
 0x477   : > { %5458 = vmatpush3.bf16.msra.mxu1 %v1746_v14  ;;  %5957 = vrcp.f32 %v1722_v52  ;;  %5459 = vmatprep.mubr.msk.bf16.mxu1 %vm6076_vm1, %v6075_v16  ;;  %v5808_v14 = vld [vmem:[%s7264_s5 + $0x8] sm:$0xff]  }
 0x478   : > { %5469 = vmatprep.subr.bf16.mxu1 %v6075_v16 }
 0x47b   : > { %v5952_v7 = vpop.eup %5951 }
 0x47c   : > { %v1735_v13 = vmul.f32 %v5952_v7, %v5936_v27 }
 0x47d   : > { %v5954_v11 = vpop.eup %5953 }
 0x47e   : > { %v1736_v53 = vmul.f32 %v5954_v11, %v5938_v29 }
 0x47f   : > { %v5956_v54 = vpop.eup %5955 }
 0x480   : > { %v1741_v55 = vpack.c.bf16 %v1736_v53, %v1735_v13  ;;  %v1737_v57 = vmul.f32 %v5956_v54, %v5940_v31  ;;  %v6007_v54 = vld [vmem:[%s6218_s29] sm:$0xff] }
 0x481   : > { %v5958_v56 = vpop.eup %5957 }
 0x482   : > { %v1738_v58 = vmul.f32 %v5958_v56, %v5942_v33  ;;  %5454 = vmatmul.mubr.msk.bf16.vlgmr.msra.gmra.mrb[36].mxu0 %vm1462_vm2, %v1741_v55 }
 0x483   : > { %5465 = vmatprep.mubr.msk.bf16.mxu0 %vm6076_vm1, %v6075_v16  ;;  %5464 = vmatpush3.bf16.msra.mxu0 %v5807_v12 }
 0x484   : > { %v1742_v8 = vpack.c.bf16 %v1738_v58, %v1737_v57  ;;  %5475 = vmatprep.subr.bf16.mxu0 %v6075_v16  ;;  %v6008_v57 = vld [vmem:[%s6218_s29 + $0x8] sm:$0xff]  ;;  %s515_s29 = scalar_lea.vmem [#allocation2], %s4673_s27  ;;  %s6015_s27 = sshll.u32 %s6078_s25, 4  ;;  %s6016_s27 = int_to_ptr.vmem [resolvable:$false] %s6015_s27 }
 0x485   : > { %s4607_s20 = sshll.u32 %s515_s29, 4  ;;  %s7211_s20 = int_to_ptr.vmem [resolvable:$true] %s4607_s20 }
 0x486   : > { %5460 = vmatmul.mubr.msk.bf16.vlgmr.msra.gmra.mrb[36].mxu1 %vm1462_vm2, %v1742_v8  ;;  %s6011_s19 = scalar_lea.vmem %s7211_s20, 256  ;;  %p6018_p0 = scmp.lt.s32.totalorder %s7211_s20, %s6016_s27 }
 0x487   : > { %5471 = vmatprep.mubr.msk.bf16.mxu1 %vm6076_vm1, %v6075_v16  ;;  %5470 = vmatpush3.bf16.msra.mxu1 %v5808_v14  ;;  %p6012_p11 = scmp.ne.s32.totalorder %s7211_s20, %s6011_s19 }
 0x488   : > { %5481 = vmatprep.subr.bf16.mxu1 %v6075_v16 }
 0x489   : > { %p6013_p12 = pnand %p6012_p11, %p6204_p5 }
 0x48b   : > { %p6014_p13 = pneg %p6013_p12 }
 0x545   : > { %v1784_v59 = vpop.f32.mrb[32].mxu0 }
 0x546   : > { %v5443_v60 = vpop.f32.mrb[33].mxu0 }
 0x547   : > { %v1787_v61 = vpop.f32.mrb[34].mxu0 }
 0x548   : > { %v1923_v63 = vpack.c.bf16 %v1787_v61, %v1784_v59  ;;  %v5444_v0 = vpop.f32.mrb[35].mxu0 }
 0x549   : > { %v1828_v1 = vpop.f32.mrb[32].mxu1 }
 0x54a   : > { %v5449_v2 = vpop.f32.mrb[33].mxu1  ;;  %5466 = vmatmul.mubr.msk.bf16.vlgmr.msra.gmra.mrb[40].mxu0 %vm1462_vm2, %v1923_v63 }
 0x54b   : > { %v1831_v3 = vpop.f32.mrb[34].mxu1  ;;  %5476 = vmatpush3.bf16.msra.mxu0 %v5809_v62  ;;  %5477 = vmatprep.mubr.msk.bf16.mxu0 %vm6076_vm1, %v6075_v16 }
 0x54c   : > { %v1924_v5 = vpack.c.bf16 %v1831_v3, %v1828_v1  ;;  %v5450_v6 = vpop.f32.mrb[35].mxu1  ;;  %v5813_v3 = vld [vmem:[%s7268_s9 + $0x4] ss:$8 sps:$4 sm:$0xff]  }
 0x54d   : > { %2268 = vmatprep.subr.bf16.mxu0 %v5813_v3  ;;  %v5814_v6 = vld [vmem:[%s7268_s9 + $0x10] ss:$8 sps:$4 sm:$0xff]  }
 0x54e   : > { %5472 = vmatmul.mubr.msk.bf16.vlgmr.msra.gmra.mrb[40].mxu1 %vm1462_vm2, %v1924_v5  ;;  %v5816_v5 = vld [vmem:[%s7268_s9 + $0x14] ss:$8 sps:$4 sm:$0xff]  }
 0x54f   : > { %5482 = vmatpush3.bf16.msra.mxu1 %v5810_v4  ;;  %5483 = vmatprep.mubr.msk.bf16.mxu1 %vm6076_vm1, %v6075_v16  ;;  %v5811_v4 = vld [vmem:[%s7268_s9] ss:$8 sps:$4 sm:$0xff]  }
 0x555   : > { %v1872_v9 = vpop.f32.mrb[36].mxu0 }
 0x556   : > { %v5455_v10 = vpop.f32.mrb[37].mxu0 }
 0x557   : > { %v1875_v15 = vpop.f32.mrb[38].mxu0  ;;  %v5817_v10 = vld [vmem:[%s7268_s9 + $0x20] ss:$8 sps:$4 sm:$0xff]  }
 0x558   : > { %v1925_v17 = vpack.c.bf16 %v1875_v15, %v1872_v9  ;;  %v5456_v18 = vpop.f32.mrb[39].mxu0  ;;  %v5819_v9 = vld [vmem:[%s7268_s9 + $0x24] ss:$8 sps:$4 sm:$0xff]   ;;  %v5820_v15 = vld [vmem:[%s7268_s9 + $0x30] ss:$8 sps:$4 sm:$0xff]  }
 0x559   : > { %v1916_v19 = vpop.f32.mrb[36].mxu1  ;;  %v6077_v18 = vmov 0  }
 0x55a   : > { %v5461_v20 = vpop.f32.mrb[37].mxu1  ;;  %5478 = vmatmul.mubr.msk.bf16.vlgmr.msra.gmra.mrb[44].mxu0 %vm1462_vm2, %v1925_v17  ;;  %v5822_v17 = vld [vmem:[%s7268_s9 + $0x34] ss:$8 sps:$4 sm:$0xff]  }
 0x55b   : > { %v1919_v21 = vpop.f32.mrb[38].mxu1  ;;  %2269 = vmatpush1.bf16.msra.mxu0 %v5811_v4  ;;  %2300 = vmatprep.mubr.bf16.mxu0 %v6077_v18  ;;  %v5824_v20 = vld [vmem:[%s7270_s11] sm:$0xff]  }
 0x55c   : > { %v1926_v22 = vpack.c.bf16 %v1919_v21, %v1916_v19  ;;  %v5462_v23 = vpop.f32.mrb[39].mxu1  ;;  %2270 = vmatprep.subr.bf16.mxu0 %v5816_v5  ;;  %v5823_v19 = vld [vmem:[%s7270_s11 + $0x40] sm:$0xff]   ;;  %v5825_v21 = vld [vmem:[%s7270_s11 + $0x48] sm:$0xff]  }
 0x55d   : > { %5138 = vmatprep.subr.bf16.mxu1 %v5823_v19  ;;  %v5827_v23 = vld [vmem:[%s7270_s11 + $0x50] sm:$0xff]  }
 0x55e   : > { %5484 = vmatmul.mubr.msk.bf16.vlgmr.msra.gmra.mrb[44].mxu1 %vm1462_vm2, %v1926_v22  ;;  %v5826_v22 = vld [vmem:[%s7270_s11 + $0x8] sm:$0xff]  }
 0x55f   : > { %2271 = vmatpush1.bf16.msra.mxu0 %v5814_v6  ;;  %5139 = vmatpush3.bf16.msra.mxu1 %v5824_v20  ;;  %v4766_v6 = vld [vmem:[%s7271_s12] ss:$0 sm:$0xff] }
 0x560   : > { %2272 = vmatprep.subr.bf16.mxu0 %v5819_v9  ;;  %5140 = vmatprep.subr.bf16.mxu1 %v5825_v21 }
 0x563   : > { %2273 = vmatpush1.bf16.msra.mxu0 %v5817_v10  ;;  %5141 = vmatpush3.bf16.msra.mxu1 %v5826_v22 }
 0x564   : > { %2274 = vmatprep.subr.bf16.mxu0 %v5822_v17  ;;  %5142 = vmatprep.subr.bf16.mxu1 %v5827_v23 }
 0x567   : > { %2275 = vmatpush1.bf16.msra.mxu0 %v5820_v15 }
 0x568   : > { %5487 = vmatprep.subr.bf16.mxu0 %v6075_v16 }
 0x61d   : > { %v1978_v24 = vpop.f32.mrb[40].mxu0 }
 0x61e   : > { %v5467_v25 = vpop.f32.mrb[41].mxu0  ;;  %v2135_v29 = vsel %vm530_vm0, %v1978_v24, 0.0  ;;  %v5828_v24 = vld [vmem:[%s7270_s11 + $0x10] sm:$0xff]  }
 0x61f   : > { %v1981_v26 = vpop.f32.mrb[42].mxu0  ;;  %v5829_v25 = vld [vmem:[%s7270_s11 + $0x58] sm:$0xff]   ;;  %5143 = vmatpush3.bf16.msra.mxu1 %v5828_v24 }
 0x620   : > { %v5468_v27 = vpop.f32.mrb[43].mxu0  ;;  %v2142_v34 = vsel %vm530_vm0, %v1981_v26, 0.0  ;;  %v5830_v26 = vld [vmem:[%s7270_s11 + $0x18] sm:$0xff]   ;;  %5144 = vmatprep.subr.bf16.mxu1 %v5829_v25 }
 0x621   : > { %v2028_v28 = vpop.f32.mrb[40].mxu1  ;;  %v5831_v27 = vld [vmem:[%s7270_s11 + $0x60] sm:$0xff]  }
 0x622   : > { %v2136_v30 = vsel %vm530_vm0, %v2028_v28, 0.0  ;;  %v5473_v31 = vpop.f32.mrb[41].mxu1  ;;  %v5832_v28 = vld [vmem:[%s7270_s11 + $0x20] sm:$0xff]  }
 0x623   : > { %v2137_v32 = vadd.f32 %v2136_v30, %v2135_v29  ;;  %v2031_v33 = vpop.f32.mrb[42].mxu1  ;;  %5145 = vmatpush3.bf16.msra.mxu1 %v5830_v26  ;;  %v5833_v29 = vld [vmem:[%s7270_s11 + $0x68] sm:$0xff]  }
 0x624   : > { %v2143_v35 = vsel %vm530_vm0, %v2031_v33, 0.0  ;;  %v5474_v36 = vpop.f32.mrb[43].mxu1  ;;  %5146 = vmatprep.subr.bf16.mxu1 %v5831_v27 }
 0x625   : > { %v2144_v37 = vadd.f32 %v2143_v35, %v2142_v34 }
 0x627   : > { %5147 = vmatpush3.bf16.msra.mxu1 %v5832_v28 }
 0x628   : > { %5148 = vmatprep.subr.bf16.mxu1 %v5833_v29 }
 0x62d   : > { %v2078_v38 = vpop.f32.mrb[44].mxu0 }
 0x62e   : > { %v2138_v39 = vsel %vm530_vm0, %v2078_v38, 0.0  ;;  %v5479_v40 = vpop.f32.mrb[45].mxu0 }
 0x62f   : > { %v2139_v41 = vadd.f32 %v2138_v39, %v2137_v32  ;;  %v2081_v42 = vpop.f32.mrb[46].mxu0 }
 0x630   : > { %v2145_v43 = vsel %vm530_vm0, %v2081_v42, 0.0  ;;  %v5480_v44 = vpop.f32.mrb[47].mxu0  ;;  %v4756_v42 = vld [vmem:[%s7267_s8] ss:$0 sm:$0xff] }
 0x631   : > { %v2146_v45 = vadd.f32 %v2145_v43, %v2144_v37  ;;  %v2128_v46 = vpop.f32.mrb[44].mxu1  ;;  %v4755_v37 = vld [vmem:[%s7266_s7] ss:$0 sm:$0xff] }
 0x632   : > { %v2140_v47 = vsel %vm530_vm0, %v2128_v46, 0.0  ;;  %v5485_v49 = vpop.f32.mrb[45].mxu1 }
 0x633   : > { %v2141_v50 = vadd.f32 %v2140_v47, %v2139_v41  ;;  %v2131_v51 = vpop.f32.mrb[46].mxu1  ;;  %v5834_v47 = vld [vmem:[%s7270_s11 + $0x28] sm:$0xff]   ;;  %v5836_v49 = vld [vmem:[%s7270_s11 + $0x30] sm:$0xff]  }
 0x634   : > { %v2147_v52 = vsel %vm530_vm0, %v2131_v51, 0.0  ;;  %v5486_v7 = vpop.f32.mrb[47].mxu1  ;;  %5149 = vmatpush3.bf16.msra.mxu1 %v5834_v47  ;;  %v5838_v51 = vld [vmem:[%s7270_s11 + $0x38] sm:$0xff]  }
 0x635   : > { %v2156_v11 = vadd.f32 %v4754_v48, %v2141_v50  ;;  %v2148_v13 = vadd.f32 %v2147_v52, %v2146_v45  ;;  %v5837_v50 = vld [vmem:[%s7270_s11 + $0x78] sm:$0xff]   ;;  %v2215_v52 = vlaneseq }
 0x637   : > { %v2157_v53 = vadd.f32 %v4754_v48, %v2148_v13  ;;  %v6590_v55 = vadd.f32 %v6007_v54, %v2156_v11  ;;  %v5835_v48 = vld [vmem:[%s7270_s11 + $0x70] sm:$0xff]   ;;  %v6687_v7 = vshrl.u32 %v2215_v52, 7  ;;  %v2213_v13 = vld [vmem:[%s7269_s10] sm:$0x3] }
 0x638   : > { %5150 = vmatprep.subr.bf16.mxu1 %v5835_v48 }
 0x639   : > { %v2162_v56 = vsel %vm530_vm0, %v6590_v55, 0.0  ;;  %v6595_v58 = vadd.f32 %v6008_v57, %v2157_v53  ;;  %5151 = vmatpush3.bf16.msra.mxu1 %v5836_v49  ;;  %v2217_v11 = vsub.s32 0, %v6687_v7  ;;  %v2221_v53 = vsub.s32 1, %v6687_v7  ;;  %v4785_v49 = vld [vmem:[%s7261_s2 + $0x1] ss:$0 sm:$0xff] }
 0x63a   : > { %2163 = vadd.xlane.f32.xlu0 %v2162_v56  ;;  %5152 = vmatprep.subr.bf16.mxu1 %v5837_v50  ;;  %v5024_v7 = vld [vmem:[%s7271_s12 + $0x1] ss:$0 sm:$0xff] }
 0x63b   : > { %v2165_v8 = vsel %vm530_vm0, %v6595_v58, 0.0  ;;  %v2218_v54 = vrot.slane %v2213_v13, %v2217_v11  ;;  %v2222_v56 = vrot.slane %v2213_v13, %v2221_v53 }
 0x63c   : > { %2166 = vadd.xlane.f32.xlu1 %v2165_v8 }
 0x63d   : > { %5153 = vmatpush3.bf16.msra.mxu1 %v5838_v51 }
 0x63e   : > { %5511 = vmatprep.subr.bf16.mxu1 %v6075_v16 }
 0x6c7   : > { %v2164_v12 = vpop.xlane.xlu0 %2163 }
 0x6c8   : > { %v2168_v14 = vmul.f32 0.015625, %v2164_v12 }
 0x6c9   : > { %v2167_v59 = vpop.xlane.xlu1 %2166 }
 0x6ca   : > { %v2170_v60 = vsub.f32 %v6590_v55, %v2168_v14  ;;  %v2169_v61 = vmul.f32 0.015625, %v2167_v59 }
 0x6cc   : > { %v2171_v62 = vsub.f32 %v6595_v58, %v2169_v61  ;;  %v2172_v63 = vmul.f32 %v2170_v60, %v2170_v60 }
 0x6ce   : > { %v2174_v0 = vsel %vm530_vm0, %v2172_v63, 0.0  ;;  %v2173_v1 = vmul.f32 %v2171_v62, %v2171_v62 }
 0x6cf   : > { %2175 = vadd.xlane.f32.xlu0 %v2174_v0 }
 0x6d0   : > { %v2177_v2 = vsel %vm530_vm0, %v2173_v1, 0.0 }
 0x6d1   : > { %2178 = vadd.xlane.f32.xlu1 %v2177_v2 }
 0x75c   : > { %v2176_v30 = vpop.xlane.xlu0 %2175 }
 0x75d   : > { %v2180_v31 = vmul.f32 0.015625, %v2176_v30 }
 0x75e   : > { %v2179_v32 = vpop.xlane.xlu1 %2178 }
 0x75f   : > { %v2182_v33 = vadd.f32 1e-05, %v2180_v31  ;;  %v2181_v34 = vmul.f32 0.015625, %v2179_v32 }
 0x761   : > { %5959 = vrsqrt.f32 %v2182_v33  ;;  %v2183_v35 = vadd.f32 1e-05, %v2181_v34  ;;  %v5839_v34 = vld [vmem:[%s7263_s4 + $0x180] sm:$0xff]  }
 0x763   : > { %5961 = vrsqrt.f32 %v2183_v35  ;;  %v5840_v35 = vld [vmem:[%s7263_s4 + $0x1c0] sm:$0xff]  }
 0x76b   : > { %v5960_v36 = vpop.eup %5959 }
 0x76c   : > { %v2186_v38 = vmul.f32 %v5960_v36, %v2170_v60  ;;  %v5841_v36 = vld [vmem:[%s7263_s4 + $0x188] sm:$0xff]  }
 0x76d   : > { %v5962_v39 = vpop.eup %5961 }
 0x76e   : > { %v2194_v40 = vmul.f32 %v4755_v37, %v2186_v38  ;;  %v2187_v41 = vmul.f32 %v5962_v39, %v2171_v62  ;;  %v5843_v38 = vld [vmem:[%s7263_s4 + $0x190] sm:$0xff]  }
 0x76f   : > { %v5844_v39 = vld [vmem:[%s7263_s4 + $0x1d0] sm:$0xff]  }
 0x770   : > { %v2195_v43 = vmul.f32 %v4755_v37, %v2187_v41  ;;  %v2202_v44 = vadd.f32 %v4756_v42, %v2194_v40  ;;  %v5842_v37 = vld [vmem:[%s7263_s4 + $0x1c8] sm:$0xff]   ;;  %v5845_v40 = vld [vmem:[%s7263_s4 + $0x198] sm:$0xff]  }
 0x771   : > { %v5846_v41 = vld [vmem:[%s7263_s4 + $0x1d8] sm:$0xff]  }
 0x772   : > { %v2203_v45 = vadd.f32 %v4756_v42, %v2195_v43 }
 0x774   : > { %v2204_v46 = vpack.c.bf16 %v2203_v45, %v2202_v44 }
 0x776   : > { %4765 = vmatmul.mubr.msk.bf16.vlgmr.msra.gmra.mrb[48].mxu0 %vm530_vm0, %v2204_v46 }
 0x777   : > { %5495 = vmatprep.mubr.msk.bf16.mxu0 %vm6076_vm1, %v6075_v16  ;;  %5488 = vmatpush3.bf16.msra.mxu0 %v5839_v34  ;;  %v5879_v34 = vld [vmem:[%s7263_s4 + $0x2a0] sm:$0xff]  }
 0x778   : > { %5489 = vmatprep.subr.bf16.mxu0 %v6075_v16 }
 0x77b   : > { %5490 = vmatpush3.bf16.msra.mxu0 %v5841_v36  ;;  %v5881_v36 = vld [vmem:[%s7263_s4 + $0x2b0] sm:$0xff]  }
 0x77c   : > { %5491 = vmatprep.subr.bf16.mxu0 %v6075_v16 }
 0x77f   : > { %5492 = vmatpush3.bf16.msra.mxu0 %v5843_v38  ;;  %v5883_v38 = vld [vmem:[%s7263_s4 + $0x2e0] sm:$0xff]  }
 0x780   : > { %5493 = vmatprep.subr.bf16.mxu0 %v6075_v16 }
 0x783   : > { %5494 = vmatpush3.bf16.msra.mxu0 %v5845_v40  ;;  %v5885_v40 = vld [vmem:[%s7263_s4 + $0x2f0] sm:$0xff]  }
 0x784   : > { %5499 = vmatprep.subr.bf16.mxu0 %v6075_v16 }
 0x849   : > { %v2302_v57 = vpop.f32.mrb[48].mxu0 }
 0x84a   : > { %v2303_v8 = vadd.f32 %v2302_v57, %v2218_v54  ;;  %v2304_v12 = vpop.f32.mrb[49].mxu0 }
 0x84b   : > { %v2305_v14 = vadd.f32 %v2304_v12, %v2222_v56  ;;  %v2306_v59 = vpop.f32.mrb[50].mxu0  ;;  %v5847_v12 = vld [vmem:[%s7263_s4 + $0x1a0] sm:$0xff]  }
 0x84c   : > { %v2307_v60 = vadd.f32 %v2306_v59, %v2218_v54  ;;  %v2308_v61 = vpop.f32.mrb[51].mxu0  ;;  %v2311_v63 = vmax.f32 %v2303_v8, 0.0  ;;  %v4786_v54 = vld [vmem:[%s7262_s3 + $0x1] ss:$0 sm:$0xff] }
 0x84d   : > { %v2309_v62 = vadd.f32 %v2308_v61, %v2222_v56  ;;  %v2312_v1 = vmax.f32 %v2305_v14, 0.0  ;;  %v5848_v14 = vld [vmem:[%s7263_s4 + $0x200] sm:$0xff]   ;;  %v5850_v61 = vld [vmem:[%s7263_s4 + $0x208] sm:$0xff]  }
 0x84e   : > { %v2313_v0 = vmax.f32 %v2307_v60, 0.0  ;;  %v5849_v60 = vld [vmem:[%s7263_s4 + $0x1a8] sm:$0xff]  }
 0x84f   : > { %v2314_v2 = vmax.f32 %v2309_v62, 0.0  ;;  %v5851_v62 = vld [vmem:[%s7263_s4 + $0x1b0] sm:$0xff]  }
 0x850   : > { %v2315_v3 = vpack.c.bf16 %v2313_v0, %v2311_v63  ;;  %v5852_v63 = vld [vmem:[%s7263_s4 + $0x210] sm:$0xff]   ;;  %v5853_v0 = vld [vmem:[%s7263_s4 + $0x1b8] sm:$0xff]  }
 0x851   : > { %v2316_v4 = vpack.c.bf16 %v2314_v2, %v2312_v1  ;;  %v5854_v1 = vld [vmem:[%s7263_s4 + $0x218] sm:$0xff]   ;;  %v5855_v2 = vld [vmem:[%s7263_s4 + $0x1e0] sm:$0xff]  }
 0x853   : > { %2484 = vmatprep.mubr.bf16.mxu1 %v2316_v4  ;;  %v5857_v4 = vld [vmem:[%s7263_s4 + $0x1e8] sm:$0xff]  }
 0x854   : > { %2485 = vmatmul.mubr.bf16.vlgmr.msra.gmra.mrb[48].mxu1 %v2315_v3  ;;  %v5856_v3 = vld [vmem:[%s7263_s4 + $0x240] sm:$0xff]  }
 0x855   : > { %5519 = vmatprep.mubr.msk.bf16.mxu1 %vm6076_vm1, %v6075_v16  ;;  %5512 = vmatpush3.bf16.msra.mxu1 %v5840_v35  ;;  %v5880_v35 = vld [vmem:[%s7263_s4 + $0x2a8] sm:$0xff]  }
 0x856   : > { %5513 = vmatprep.subr.bf16.mxu1 %v6075_v16 }
 0x859   : > { %5514 = vmatpush3.bf16.msra.mxu1 %v5842_v37  ;;  %v5882_v37 = vld [vmem:[%s7263_s4 + $0x2b8] sm:$0xff]  }
 0x85a   : > { %5515 = vmatprep.subr.bf16.mxu1 %v6075_v16 }
 0x85d   : > { %5516 = vmatpush3.bf16.msra.mxu1 %v5844_v39  ;;  %v5884_v39 = vld [vmem:[%s7263_s4 + $0x2e8] sm:$0xff]  }
 0x85e   : > { %5517 = vmatprep.subr.bf16.mxu1 %v6075_v16 }
 0x861   : > { %5518 = vmatpush3.bf16.msra.mxu1 %v5846_v41  ;;  %v5886_v41 = vld [vmem:[%s7263_s4 + $0x2f8] sm:$0xff]  }
 0x862   : > { %5535 = vmatprep.subr.bf16.mxu1 %v6075_v16 }
 0x927   : > { %v5154_v5 = vpop.f32.mrb[48].mxu1 }
 0x928   : > { %v5155_v9 = vpop.f32.mrb[49].mxu1 }
 0x929   : > { %v5156_v10 = vadd.f32 %v5155_v9, %v5154_v5  ;;  %v5157_v15 = vpop.f32.mrb[50].mxu1  ;;  %v5858_v5 = vld [vmem:[%s7263_s4 + $0x248] sm:$0xff]   ;;  %v5860_v9 = vld [vmem:[%s7263_s4 + $0x250] sm:$0xff]  }
 0x92a   : > { %v5158_v17 = vpop.f32.mrb[51].mxu1 }
 0x92b   : > { %v2487_v19 = vadd.f32 %v5156_v10, %v4766_v6  ;;  %v5159_v20 = vadd.f32 %v5158_v17, %v5157_v15  ;;  %v5861_v10 = vld [vmem:[%s7263_s4 + $0x1f8] sm:$0xff]   ;;  %v5863_v17 = vld [vmem:[%s7263_s4 + $0x220] sm:$0xff]  }
 0x92c   : > { %v5862_v15 = vld [vmem:[%s7263_s4 + $0x258] sm:$0xff]  }
 0x92d   : > { %v6704_v21 = vadd.f32 %v2487_v19, %v6590_v55  ;;  %v2490_v22 = vadd.f32 %v5159_v20, %v4766_v6  ;;  %v5859_v6 = vld [vmem:[%s7263_s4 + $0x1f0] sm:$0xff]   ;;  %v5864_v19 = vld [vmem:[%s7263_s4 + $0x280] sm:$0xff]   ;;  %v5865_v20 = vld [vmem:[%s7263_s4 + $0x228] sm:$0xff]  }
 0x92f   : > { %v6707_v23 = vadd.f32 %v2490_v22, %v6595_v58  ;;  %v2499_v24 = vsel %vm530_vm0, %v6704_v21, 0.0  ;;  %v5866_v22 = vld [vmem:[%s7263_s4 + $0x288] sm:$0xff]  }
 0x930   : > { %2500 = vadd.xlane.f32.xlu0 %v2499_v24  ;;  %v5867_v24 = vld [vmem:[%s7263_s4 + $0x230] sm:$0xff]  }
 0x931   : > { %v2502_v25 = vsel %vm530_vm0, %v6707_v23, 0.0 }
 0x932   : > { %2503 = vadd.xlane.f32.xlu1 %v2502_v25  ;;  %v5868_v25 = vld [vmem:[%s7263_s4 + $0x290] sm:$0xff]  }
 0x9bd   : > { %v2501_v26 = vpop.xlane.xlu0 %2500 }
 0x9be   : > { %v2505_v27 = vmul.f32 0.015625, %v2501_v26  ;;  %v5869_v26 = vld [vmem:[%s7263_s4 + $0x238] sm:$0xff]  }
 0x9bf   : > { %v2504_v28 = vpop.xlane.xlu1 %2503 }
 0x9c0   : > { %v2507_v29 = vsub.f32 %v6704_v21, %v2505_v27  ;;  %v2506_v30 = vmul.f32 0.015625, %v2504_v28  ;;  %v5870_v27 = vld [vmem:[%s7263_s4 + $0x298] sm:$0xff]   ;;  %v5871_v28 = vld [vmem:[%s7263_s4 + $0x260] sm:$0xff]  }
 0x9c2   : > { %v2508_v55 = vsub.f32 %v6707_v23, %v2506_v30  ;;  %v2509_v31 = vmul.f32 %v2507_v29, %v2507_v29  ;;  %v5873_v30 = vld [vmem:[%s7263_s4 + $0x268] sm:$0xff]  }
 0x9c4   : > { %v2511_v58 = vsel %vm530_vm0, %v2509_v31, 0.0  ;;  %v2510_v32 = vmul.f32 %v2508_v55, %v2508_v55  ;;  %v5875_v31 = vld [vmem:[%s7263_s4 + $0x270] sm:$0xff]  }
 0x9c5   : > { %2512 = vadd.xlane.f32.xlu0 %v2511_v58  ;;  %v5876_v58 = vld [vmem:[%s7263_s4 + $0x2d0] sm:$0xff]  }
 0x9c6   : > { %v2514_v33 = vsel %vm530_vm0, %v2510_v32, 0.0  ;;  %v5877_v32 = vld [vmem:[%s7263_s4 + $0x278] sm:$0xff]  }
 0x9c7   : > { %2515 = vadd.xlane.f32.xlu1 %v2514_v33  ;;  %v5878_v33 = vld [vmem:[%s7263_s4 + $0x2d8] sm:$0xff]  }
 0xa52   : > { %v2513_v42 = vpop.xlane.xlu0 %2512 }
 0xa53   : > { %v2517_v43 = vmul.f32 0.015625, %v2513_v42 }
 0xa54   : > { %v2516_v44 = vpop.xlane.xlu1 %2515 }
 0xa55   : > { %v2519_v45 = vadd.f32 1e-05, %v2517_v43  ;;  %v2518_v46 = vmul.f32 0.015625, %v2516_v44 }
 0xa57   : > { %5963 = vrsqrt.f32 %v2519_v45  ;;  %v2520_v47 = vadd.f32 1e-05, %v2518_v46 }
 0xa59   : > { %5965 = vrsqrt.f32 %v2520_v47 }
 0xa61   : > { %v5964_v48 = vpop.eup %5963 }
 0xa62   : > { %v2523_v50 = vmul.f32 %v5964_v48, %v2507_v29  ;;  %v5872_v29 = vld [vmem:[%s7263_s4 + $0x2c0] sm:$0xff]  }
 0xa63   : > { %v5966_v51 = vpop.eup %5965 }
 0xa64   : > { %v2531_v52 = vmul.f32 %v4785_v49, %v2523_v50  ;;  %v2524_v13 = vmul.f32 %v5966_v51, %v2508_v55  ;;  %v5874_v55 = vld [vmem:[%s7263_s4 + $0x2c8] sm:$0xff]  }
 0xa66   : > { %v2532_v56 = vmul.f32 %v4785_v49, %v2524_v13  ;;  %v2539_v57 = vadd.f32 %v4786_v54, %v2531_v52 }
 0xa68   : > { %v2540_v8 = vadd.f32 %v4786_v54, %v2532_v56 }
 0xa6a   : > { %v6761_v59 = vpack.c.bf16 %v2540_v8, %v2539_v57 }
 0xa6c   : > { %5496 = vmatmul.mubr.msk.bf16.vlgmr.msra.gmra.mrb[52].mxu0 %vm530_vm0, %v6761_v59  ;;  %5520 = vmatmul.mubr.msk.bf16.vlgmr.msra.gmra.mrb[52].mxu1 %vm530_vm0, %v6761_v59 }
 0xa6d   : > { %5500 = vmatpush3.bf16.msra.mxu0 %v5847_v12  ;;  %5536 = vmatpush3.bf16.msra.mxu1 %v5848_v14 }
 0xa6e   : > { %5501 = vmatprep.subr.bf16.mxu0 %v6075_v16  ;;  %5537 = vmatprep.subr.bf16.mxu1 %v6075_v16 }
 0xa6f   : > { %5507 = vmatprep.mubr.msk.bf16.mxu0 %vm6076_vm1, %v6075_v16  ;;  %5543 = vmatprep.mubr.msk.bf16.mxu1 %vm6076_vm1, %v6075_v16 }
 0xa71   : > { %5502 = vmatpush3.bf16.msra.mxu0 %v5849_v60  ;;  %5538 = vmatpush3.bf16.msra.mxu1 %v5850_v61 }
 0xa72   : > { %5503 = vmatprep.subr.bf16.mxu0 %v6075_v16  ;;  %5539 = vmatprep.subr.bf16.mxu1 %v6075_v16 }
 0xa75   : > { %5504 = vmatpush3.bf16.msra.mxu0 %v5851_v62  ;;  %5540 = vmatpush3.bf16.msra.mxu1 %v5852_v63 }
 0xa76   : > { %5505 = vmatprep.subr.bf16.mxu0 %v6075_v16  ;;  %5541 = vmatprep.subr.bf16.mxu1 %v6075_v16 }
 0xa79   : > { %5506 = vmatpush3.bf16.msra.mxu0 %v5853_v0  ;;  %5542 = vmatpush3.bf16.msra.mxu1 %v5854_v1 }
 0xa7a   : > { %5523 = vmatprep.subr.bf16.mxu0 %v6075_v16  ;;  %5559 = vmatprep.subr.bf16.mxu1 %v6075_v16 }
 0xa7c   : > { %5508 = vmatmul.mubr.msk.bf16.vlgmr.msra.gmra.mrb[56].mxu0 %vm530_vm0, %v6761_v59  ;;  %5544 = vmatmul.mubr.msk.bf16.vlgmr.msra.gmra.mrb[56].mxu1 %vm530_vm0, %v6761_v59 }
 0xa7d   : > { %5524 = vmatpush3.bf16.msra.mxu0 %v5855_v2  ;;  %5560 = vmatpush3.bf16.msra.mxu1 %v5856_v3 }
 0xa7e   : > { %5525 = vmatprep.subr.bf16.mxu0 %v6075_v16  ;;  %5561 = vmatprep.subr.bf16.mxu1 %v6075_v16 }
 0xa7f   : > { %5531 = vmatprep.mubr.msk.bf16.mxu0 %vm6076_vm1, %v6075_v16  ;;  %5567 = vmatprep.mubr.msk.bf16.mxu1 %vm6076_vm1, %v6075_v16 }
 0xa81   : > { %5526 = vmatpush3.bf16.msra.mxu0 %v5857_v4  ;;  %5562 = vmatpush3.bf16.msra.mxu1 %v5858_v5 }
 0xa82   : > { %5527 = vmatprep.subr.bf16.mxu0 %v6075_v16  ;;  %5563 = vmatprep.subr.bf16.mxu1 %v6075_v16 }
 0xa85   : > { %5528 = vmatpush3.bf16.msra.mxu0 %v5859_v6  ;;  %5564 = vmatpush3.bf16.msra.mxu1 %v5860_v9 }
 0xa86   : > { %5529 = vmatprep.subr.bf16.mxu0 %v6075_v16  ;;  %5565 = vmatprep.subr.bf16.mxu1 %v6075_v16 }
 0xa89   : > { %5530 = vmatpush3.bf16.msra.mxu0 %v5861_v10  ;;  %5566 = vmatpush3.bf16.msra.mxu1 %v5862_v15 }
 0xa8a   : > { %5547 = vmatprep.subr.bf16.mxu0 %v6075_v16  ;;  %5583 = vmatprep.subr.bf16.mxu1 %v6075_v16 }
 0xa8c   : > { %5532 = vmatmul.mubr.msk.bf16.vlgmr.msra.gmra.mrb[60].mxu0 %vm530_vm0, %v6761_v59  ;;  %5568 = vmatmul.mubr.msk.bf16.vlgmr.msra.gmra.mrb[60].mxu1 %vm530_vm0, %v6761_v59 }
 0xa8d   : > { %5548 = vmatpush3.bf16.msra.mxu0 %v5863_v17  ;;  %5584 = vmatpush3.bf16.msra.mxu1 %v5864_v19 }
 0xa8e   : > { %5549 = vmatprep.subr.bf16.mxu0 %v6075_v16  ;;  %5585 = vmatprep.subr.bf16.mxu1 %v6075_v16 }
 0xa8f   : > { %5555 = vmatprep.mubr.msk.bf16.mxu0 %vm6076_vm1, %v6075_v16  ;;  %5591 = vmatprep.mubr.msk.bf16.mxu1 %vm6076_vm1, %v6075_v16 }
 0xa91   : > { %5550 = vmatpush3.bf16.msra.mxu0 %v5865_v20  ;;  %5586 = vmatpush3.bf16.msra.mxu1 %v5866_v22 }
 0xa92   : > { %5551 = vmatprep.subr.bf16.mxu0 %v6075_v16  ;;  %5587 = vmatprep.subr.bf16.mxu1 %v6075_v16 }
 0xa95   : > { %5552 = vmatpush3.bf16.msra.mxu0 %v5867_v24  ;;  %5588 = vmatpush3.bf16.msra.mxu1 %v5868_v25 }
 0xa96   : > { %5553 = vmatprep.subr.bf16.mxu0 %v6075_v16  ;;  %5589 = vmatprep.subr.bf16.mxu1 %v6075_v16 }
 0xa99   : > { %5554 = vmatpush3.bf16.msra.mxu0 %v5869_v26  ;;  %5590 = vmatpush3.bf16.msra.mxu1 %v5870_v27 }
 0xa9a   : > { %5571 = vmatprep.subr.bf16.mxu0 %v6075_v16  ;;  %5607 = vmatprep.subr.bf16.mxu1 %v6075_v16 }
 0xa9c   : > { %5556 = vmatmul.mubr.msk.bf16.vlgmr.msra.gmra.mrb[64].mxu0 %vm530_vm0, %v6761_v59  ;;  %5592 = vmatmul.mubr.msk.bf16.vlgmr.msra.gmra.mrb[64].mxu1 %vm530_vm0, %v6761_v59 }
 0xa9d   : > { %5572 = vmatpush3.bf16.msra.mxu0 %v5871_v28  ;;  %5608 = vmatpush3.bf16.msra.mxu1 %v5872_v29 }
 0xa9e   : > { %5573 = vmatprep.subr.bf16.mxu0 %v6075_v16  ;;  %5609 = vmatprep.subr.bf16.mxu1 %v6075_v16 }
 0xa9f   : > { %5579 = vmatprep.mubr.msk.bf16.mxu0 %vm6076_vm1, %v6075_v16  ;;  %5615 = vmatprep.mubr.msk.bf16.mxu1 %vm6076_vm1, %v6075_v16 }
 0xaa1   : > { %5574 = vmatpush3.bf16.msra.mxu0 %v5873_v30  ;;  %5610 = vmatpush3.bf16.msra.mxu1 %v5874_v55 }
 0xaa2   : > { %5575 = vmatprep.subr.bf16.mxu0 %v6075_v16  ;;  %5611 = vmatprep.subr.bf16.mxu1 %v6075_v16 }
 0xaa5   : > { %5576 = vmatpush3.bf16.msra.mxu0 %v5875_v31  ;;  %5612 = vmatpush3.bf16.msra.mxu1 %v5876_v58 }
 0xaa6   : > { %5577 = vmatprep.subr.bf16.mxu0 %v6075_v16  ;;  %5613 = vmatprep.subr.bf16.mxu1 %v6075_v16 }
 0xaa9   : > { %5578 = vmatpush3.bf16.msra.mxu0 %v5877_v32  ;;  %5614 = vmatpush3.bf16.msra.mxu1 %v5878_v33 }
 0xaaa   : > { %5595 = vmatprep.subr.bf16.mxu0 %v6075_v16  ;;  %5631 = vmatprep.subr.bf16.mxu1 %v6075_v16 }
 0xaac   : > { %5580 = vmatmul.mubr.msk.bf16.vlgmr.msra.gmra.mrb[68].mxu0 %vm530_vm0, %v6761_v59  ;;  %5616 = vmatmul.mubr.msk.bf16.vlgmr.msra.gmra.mrb[68].mxu1 %vm530_vm0, %v6761_v59 }
 0xaad   : > { %5596 = vmatpush3.bf16.msra.mxu0 %v5879_v34  ;;  %5603 = vmatprep.mubr.msk.bf16.mxu0 %vm6076_vm1, %v6075_v16 }
 0xaae   : > { %5597 = vmatprep.subr.bf16.mxu0 %v6075_v16  ;;  %5633 = vmatprep.mubr.msk.bf16.mxu1 %vm6076_vm1, %v6075_v16 }
 0xab1   : > { %5598 = vmatpush3.bf16.msra.mxu0 %v5880_v35 }
 0xab2   : > { %5599 = vmatprep.subr.bf16.mxu0 %v6075_v16 }
 0xab5   : > { %5600 = vmatpush3.bf16.msra.mxu0 %v5881_v36 }
 0xab6   : > { %5601 = vmatprep.subr.bf16.mxu0 %v6075_v16 }
 0xab9   : > { %5602 = vmatpush3.bf16.msra.mxu0 %v5882_v37 }
 0xaba   : > { %5619 = vmatprep.subr.bf16.mxu0 %v6075_v16 }
 0xabc   : > { %5604 = vmatmul.mubr.msk.bf16.vlgmr.msra.gmra.mrb[72].mxu0 %vm530_vm0, %v6761_v59 }
 0xabd   : > { %5620 = vmatpush3.bf16.msra.mxu0 %v5883_v38  ;;  %5627 = vmatprep.mubr.msk.bf16.mxu0 %vm6076_vm1, %v6075_v16 }
 0xabe   : > { %5621 = vmatprep.subr.bf16.mxu0 %v6075_v16 }
 0xac1   : > { %5622 = vmatpush3.bf16.msra.mxu0 %v5884_v39 }
 0xac2   : > { %5623 = vmatprep.subr.bf16.mxu0 %v6075_v16 }
 0xac5   : > { %5624 = vmatpush3.bf16.msra.mxu0 %v5885_v40 }
 0xac6   : > { %5625 = vmatprep.subr.bf16.mxu0 %v6075_v16 }
 0xac9   : > { %5626 = vmatpush3.bf16.msra.mxu0 %v5886_v41 }
 0xaca   : > { %5643 = vmatprep.subr.bf16.mxu0 %v6075_v16 }
 0xacc   : > { %5628 = vmatmul.mubr.msk.bf16.vlgmr.msra.gmra.mrb[76].mxu0 %vm530_vm0, %v6761_v59 }
 0xacd   : > { %5645 = vmatprep.mubr.msk.bf16.mxu0 %vm6076_vm1, %v6075_v16 }
 0xb3f   : > { %v2700_v42 = vpop.f32.mrb[52].mxu0  ;;  %v2830_v43 = vpop.f32.mrb[52].mxu1 }
 0xb40   : > { %v5497_v44 = vpop.f32.mrb[53].mxu0  ;;  %v5521_v45 = vpop.f32.mrb[53].mxu1 }
 0xb41   : > { %v2703_v46 = vpop.f32.mrb[54].mxu0  ;;  %v2833_v47 = vpop.f32.mrb[54].mxu1 }
 0xb42   : > { %v3422_v48 = vpack.c.bf16 %v2703_v46, %v2700_v42  ;;  %v3424_v49 = vpack.c.bf16 %v2833_v47, %v2830_v43  ;;  %v5498_v50 = vpop.f32.mrb[55].mxu0  ;;  %v5522_v51 = vpop.f32.mrb[55].mxu1 }
 0xb43   : > { %v6009_v50 = vld [vmem:[%s7289_s1] sm:$0xff] }
 0xb4f   : > { %v2765_v52 = vpop.f32.mrb[56].mxu0  ;;  %v2960_v13 = vpop.f32.mrb[56].mxu1 }
 0xb50   : > { %v5509_v54 = vpop.f32.mrb[57].mxu0  ;;  %v5545_v56 = vpop.f32.mrb[57].mxu1 }
 0xb51   : > { %v2768_v57 = vpop.f32.mrb[58].mxu0  ;;  %v2963_v8 = vpop.f32.mrb[58].mxu1  ;;  %v6010_v54 = vld [vmem:[%s7289_s1 + $0x8] sm:$0xff]  ;;  %s6017_s1 = scalar_lea.vmem %s6016_s27, 512 }
 0xb52   : > { %v3423_v12 = vpack.c.bf16 %v2768_v57, %v2765_v52  ;;  %v3426_v14 = vpack.c.bf16 %v2963_v8, %v2960_v13  ;;  %v5510_v59 = vpop.f32.mrb[59].mxu0  ;;  %v5546_v60 = vpop.f32.mrb[59].mxu1  ;;  %p6019_p1 = scmp.lt.s32.totalorder %s6017_s1, %s6011_s19 }
 0xb54   : > { %v3434_v61 = vsel %vm1462_vm2, %v3426_v14, 0  ;;  %p6020_p2 = por %p6019_p1, %p6018_p0 }
 0xb55   : > { %5632 = vmatpush3.bf16.xpose.msra.mxu1 %v3434_v61 }
 0xb56   : > { %5637 = vmatprep.subr.bf16.mxu1 %v6075_v16  ;;  %p6021_p3 = pnand %p6020_p2, %p6014_p13 }
 0xb5c   : > { %5634 = vmatmul.mubr.msk.bf16.vlgmr.msra.gmra.mrb[72].mxu1 %vm1462_vm2, %v3422_v48 }
 0xb5d   : > { %5639 = vmatprep.mubr.msk.bf16.mxu1 %vm6076_vm1, %v6075_v16 }
 0xb5f   : > { %v2895_v62 = vpop.f32.mrb[60].mxu0  ;;  %v3090_v63 = vpop.f32.mrb[60].mxu1 }
 0xb60   : > { %v5533_v0 = vpop.f32.mrb[61].mxu0  ;;  %v5569_v1 = vpop.f32.mrb[61].mxu1 }
 0xb61   : > { %v2898_v2 = vpop.f32.mrb[62].mxu0  ;;  %v3093_v3 = vpop.f32.mrb[62].mxu1 }
 0xb62   : > { %v3425_v4 = vpack.c.bf16 %v2898_v2, %v2895_v62  ;;  %v3428_v5 = vpack.c.bf16 %v3093_v3, %v3090_v63  ;;  %v5534_v6 = vpop.f32.mrb[63].mxu0  ;;  %v5570_v9 = vpop.f32.mrb[63].mxu1 }
 0xb64   : > { %v3528_v10 = vsel %vm1462_vm2, %v3428_v5, 0 }
 0xb65   : > { %5644 = vmatpush3.bf16.xpose.msra.mxu0 %v3528_v10 }
 0xb66   : > { %5655 = vmatprep.subr.bf16.mxu0 %v6075_v16 }
 0xb6c   : > { %5646 = vmatmul.mubr.msk.bf16.vlgmr.msra.gmra.mrb[80].mxu0 %vm1462_vm2, %v3424_v49 }
 0xb6d   : > { %5657 = vmatprep.mubr.msk.bf16.mxu0 %vm6076_vm1, %v6075_v16 }
 0xb6f   : > { %v3025_v15 = vpop.f32.mrb[64].mxu0  ;;  %v3220_v17 = vpop.f32.mrb[64].mxu1 }
 0xb70   : > { %v5557_v19 = vpop.f32.mrb[65].mxu0  ;;  %v5593_v20 = vpop.f32.mrb[65].mxu1 }
 0xb71   : > { %v3028_v22 = vpop.f32.mrb[66].mxu0  ;;  %v3223_v24 = vpop.f32.mrb[66].mxu1 }
 0xb72   : > { %v3427_v25 = vpack.c.bf16 %v3028_v22, %v3025_v15  ;;  %v3710_v26 = vpack.c.bf16 %v3223_v24, %v3220_v17  ;;  %v5558_v27 = vpop.f32.mrb[67].mxu0  ;;  %v5594_v28 = vpop.f32.mrb[67].mxu1 }
 0xb74   : > { %v3481_v29 = vsel %vm1462_vm2, %v3427_v25, 0  ;;  %5656 = vmatpush3.bf16.msra.mxu0 %v3710_v26 }
 0xb75   : > { %5638 = vmatpush3.bf16.xpose.msra.mxu1 %v3481_v29  ;;  %5667 = vmatprep.subr.bf16.mxu0 %v6075_v16 }
 0xb76   : > { %5649 = vmatprep.subr.bf16.mxu1 %v6075_v16 }
 0xb7c   : > { %5640 = vmatmul.mubr.msk.bf16.vlgmr.msra.gmra.mrb[76].mxu1 %vm1462_vm2, %v3423_v12 }
 0xb7d   : > { %5651 = vmatprep.mubr.msk.bf16.mxu1 %vm6076_vm1, %v6075_v16 }
 0xb7f   : > { %v3155_v30 = vpop.f32.mrb[68].mxu0  ;;  %v6981_v55 = vpop.f32.mrb[68].mxu1 }
 0xb80   : > { %v5581_v31 = vpop.f32.mrb[69].mxu0  ;;  %v5617_v58 = vpop.f32.mrb[69].mxu1 }
 0xb81   : > { %v3158_v32 = vpop.f32.mrb[70].mxu0  ;;  %v6983_v33 = vpop.f32.mrb[70].mxu1 }
 0xb82   : > { %v3429_v34 = vpack.c.bf16 %v3158_v32, %v3155_v30  ;;  %v3712_v35 = vpack.c.bf16 %v6983_v33, %v6981_v55  ;;  %v5582_v36 = vpop.f32.mrb[71].mxu0  ;;  %v5618_v37 = vpop.f32.mrb[71].mxu1 }
 0xb84   : > { %v3575_v38 = vsel %vm1462_vm2, %v3429_v34, 0 }
 0xb85   : > { %5650 = vmatpush3.bf16.xpose.msra.mxu1 %v3575_v38 }
 0xb86   : > { %5661 = vmatprep.subr.bf16.mxu1 %v6075_v16 }
 0xb8c   : > { %5652 = vmatmul.mubr.msk.bf16.vlgmr.msra.gmra.mrb[80].mxu1 %vm1462_vm2, %v3425_v4 }
 0xb8d   : > { %5663 = vmatprep.mubr.msk.bf16.mxu1 %vm6076_vm1, %v6075_v16 }
 0xb8f   : > { %v3285_v39 = vpop.f32.mrb[72].mxu0 }
 0xb90   : > { %v5605_v40 = vpop.f32.mrb[73].mxu0 }
 0xb91   : > { %v3288_v41 = vpop.f32.mrb[74].mxu0 }
 0xb92   : > { %v3711_v42 = vpack.c.bf16 %v3288_v41, %v3285_v39  ;;  %v5606_v43 = vpop.f32.mrb[75].mxu0 }
 0xb94   : > { %5662 = vmatpush3.bf16.msra.mxu1 %v3711_v42 }
 0xb95   : > { %5673 = vmatprep.subr.bf16.mxu1 %v6075_v16 }
 0xb9f   : > { %v6993_v44 = vpop.f32.mrb[76].mxu0 }
 0xba0   : > { %v5629_v45 = vpop.f32.mrb[77].mxu0 }
 0xba1   : > { %v6995_v46 = vpop.f32.mrb[78].mxu0 }
 0xba2   : > { %v3713_v47 = vpack.c.bf16 %v6995_v46, %v6993_v44  ;;  %v5630_v48 = vpop.f32.mrb[79].mxu0  ;;  %v5887_v44 = vld [vmem:[%s7264_s5 + $0x20] sm:$0xff]   ;;  %v5888_v46 = vld [vmem:[%s7264_s5 + $0x28] sm:$0xff]  }
 0xc2f   : > { %v3470_v49 = vpop.f32.mrb[72].mxu1 }
 0xc30   : > { %v3471_v51 = vadd.f32 %v6009_v50, %v3470_v49  ;;  %v5635_v52 = vpop.f32.mrb[73].mxu1 }
 0xc31   : > { %v3473_v13 = vpop.f32.mrb[74].mxu1 }
 0xc32   : > { %v3474_v56 = vadd.f32 %v6010_v54, %v3473_v13  ;;  %v5636_v57 = vpop.f32.mrb[75].mxu1  ;;  %v3618_v8 = vsel %vm1462_vm2, %v3471_v51, -inf }
 0xc33   : > { %3619 = vmax.xlane.f32.xlu0 %v3618_v8 }
 0xc34   : > { %v3621_v12 = vsel %vm1462_vm2, %v3474_v56, -inf }
 0xc35   : > { %3622 = vmax.xlane.f32.xlu1 %v3621_v12 }
 0xc3f   : > { %v3564_v14 = vpop.f32.mrb[80].mxu0 }
 0xc40   : > { %v5647_v59 = vpop.f32.mrb[81].mxu0  ;;  %v3565_v2 = vadd.f32 %v6009_v50, %v3564_v14 }
 0xc41   : > { %v3567_v60 = vpop.f32.mrb[82].mxu0 }
 0xc42   : > { %v5648_v61 = vpop.f32.mrb[83].mxu0  ;;  %v3568_v6 = vadd.f32 %v6010_v54, %v3567_v60  ;;  %v3630_v10 = vsel %vm1462_vm2, %v3565_v2, -inf }
 0xc44   : > { %v3633_v15 = vsel %vm1462_vm2, %v3568_v6, -inf }
 0xc4f   : > { %v3517_v62 = vpop.f32.mrb[76].mxu1 }
 0xc50   : > { %v3518_v63 = vadd.f32 %v6009_v50, %v3517_v62  ;;  %v5641_v0 = vpop.f32.mrb[77].mxu1 }
 0xc51   : > { %v3520_v1 = vpop.f32.mrb[78].mxu1 }
 0xc52   : > { %v3521_v3 = vadd.f32 %v6010_v54, %v3520_v1  ;;  %v5642_v4 = vpop.f32.mrb[79].mxu1  ;;  %v3624_v5 = vsel %vm1462_vm2, %v3518_v63, -inf }
 0xc53   : > { %3625 = vmax.xlane.f32.xlu0 %v3624_v5 }
 0xc54   : > { %v3627_v9 = vsel %vm1462_vm2, %v3521_v3, -inf }
 0xc55   : > { %3628 = vmax.xlane.f32.xlu1 %v3627_v9 }
 0xc57   : > { %3631 = vmax.xlane.f32.xlu0 %v3630_v10 }
 0xc59   : > { %3634 = vmax.xlane.f32.xlu1 %v3633_v15 }
 0xc5f   : > { %v3611_v17 = vpop.f32.mrb[80].mxu1 }
 0xc60   : > { %v3612_v19 = vadd.f32 %v6009_v50, %v3611_v17  ;;  %v5653_v20 = vpop.f32.mrb[81].mxu1 }
 0xc61   : > { %v3614_v22 = vpop.f32.mrb[82].mxu1 }
 0xc62   : > { %v3615_v24 = vadd.f32 %v6010_v54, %v3614_v22  ;;  %v5654_v25 = vpop.f32.mrb[83].mxu1  ;;  %v3636_v26 = vsel %vm1462_vm2, %v3612_v19, -inf }
 0xc63   : > { %3637 = vmax.xlane.f32.xlu0 %v3636_v26 }
 0xc64   : > { %v3639_v27 = vsel %vm1462_vm2, %v3615_v24, -inf }
 0xc65   : > { %3640 = vmax.xlane.f32.xlu1 %v3639_v27 }
 0xcc0   : > { %v3620_v28 = vpop.xlane.xlu0 %3619 }
 0xcc1   : > { %v3642_v29 = vsub.f32 %v3471_v51, %v3620_v28 }
 0xcc2   : > { %v3623_v30 = vpop.xlane.xlu1 %3622 }
 0xcc3   : > { %v3650_v31 = vmul.f32 1.442695, %v3642_v29  ;;  %v3643_v58 = vsub.f32 %v3474_v56, %v3623_v30 }
 0xcc5   : > { %5967 = vpow2.f32 %v3650_v31  ;;  %v3652_v32 = vmul.f32 1.442695, %v3643_v58 }
 0xcc7   : > { %5969 = vpow2.f32 %v3652_v32 }
 0xccf   : > { %v5968_v34 = vpop.eup %5967 }
 0xcd0   : > { %v3666_v36 = vsel %vm1462_vm2, %v5968_v34, 0.0 }
 0xcd1   : > { %v5970_v37 = vpop.eup %5969  ;;  %3667 = vadd.xlane.f32.xlu0 %v3666_v36 }
 0xcd2   : > { %v3669_v38 = vsel %vm1462_vm2, %v5970_v37, 0.0 }
 0xcd3   : > { %3670 = vadd.xlane.f32.xlu1 %v3669_v38 }
 0xce0   : > { %v3626_v39 = vpop.xlane.xlu0 %3625 }
 0xce1   : > { %v3644_v40 = vsub.f32 %v3518_v63, %v3626_v39 }
 0xce2   : > { %v3629_v41 = vpop.xlane.xlu1 %3628 }
 0xce3   : > { %v3654_v42 = vmul.f32 1.442695, %v3644_v40  ;;  %v3645_v43 = vsub.f32 %v3521_v3, %v3629_v41 }
 0xce4   : > { %v3632_v45 = vpop.xlane.xlu0 %3631 }
 0xce5   : > { %5971 = vpow2.f32 %v3654_v42  ;;  %v3656_v48 = vmul.f32 1.442695, %v3645_v43  ;;  %v3646_v49 = vsub.f32 %v3565_v2, %v3632_v45 }
 0xce6   : > { %v3635_v50 = vpop.xlane.xlu1 %3634 }
 0xce7   : > { %5973 = vpow2.f32 %v3656_v48  ;;  %v3658_v51 = vmul.f32 1.442695, %v3646_v49  ;;  %v3647_v52 = vsub.f32 %v3568_v6, %v3635_v50  ;;  %v5889_v48 = vld [vmem:[%s7264_s5 + $0x30] sm:$0xff]  }
 0xce9   : > { %5975 = vpow2.f32 %v3658_v51  ;;  %v3660_v13 = vmul.f32 1.442695, %v3647_v52 }
 0xceb   : > { %5977 = vpow2.f32 %v3660_v13 }
 0xcef   : > { %v5972_v54 = vpop.eup %5971 }
 0xcf0   : > { %v3638_v56 = vpop.xlane.xlu0 %3637  ;;  %v3672_v57 = vsel %vm1462_vm2, %v5972_v54, 0.0 }
 0xcf1   : > { %v5974_v8 = vpop.eup %5973  ;;  %v3648_v12 = vsub.f32 %v3612_v19, %v3638_v56  ;;  %3673 = vadd.xlane.f32.xlu0 %v3672_v57 }
 0xcf2   : > { %v3641_v14 = vpop.xlane.xlu1 %3640  ;;  %v3675_v59 = vsel %vm1462_vm2, %v5974_v8, 0.0 }
 0xcf3   : > { %v5976_v60 = vpop.eup %5975  ;;  %v3662_v61 = vmul.f32 1.442695, %v3648_v12  ;;  %v3649_v62 = vsub.f32 %v3615_v24, %v3641_v14  ;;  %3676 = vadd.xlane.f32.xlu1 %v3675_v59 }
 0xcf4   : > { %v3678_v63 = vsel %vm1462_vm2, %v5976_v60, 0.0 }
 0xcf5   : > { %v5978_v0 = vpop.eup %5977  ;;  %5979 = vpow2.f32 %v3662_v61  ;;  %v3664_v1 = vmul.f32 1.442695, %v3649_v62  ;;  %3679 = vadd.xlane.f32.xlu0 %v3678_v63 }
 0xcf6   : > { %v3681_v2 = vsel %vm1462_vm2, %v5978_v0, 0.0 }
 0xcf7   : > { %5981 = vpow2.f32 %v3664_v1  ;;  %3682 = vadd.xlane.f32.xlu1 %v3681_v2 }
 0xcff   : > { %v5980_v3 = vpop.eup %5979 }
 0xd00   : > { %v3684_v4 = vsel %vm1462_vm2, %v5980_v3, 0.0 }
 0xd01   : > { %v5982_v5 = vpop.eup %5981  ;;  %3685 = vadd.xlane.f32.xlu0 %v3684_v4 }
 0xd02   : > { %v3687_v6 = vsel %vm1462_vm2, %v5982_v5, 0.0 }
 0xd03   : > { %3688 = vadd.xlane.f32.xlu1 %v3687_v6 }
 0xd5e   : > { %v3668_v9 = vpop.xlane.xlu0 %3667 }
 0xd5f   : > { %5983 = vrcp.f32 %v3668_v9 }
 0xd60   : > { %v3671_v10 = vpop.xlane.xlu1 %3670 }
 0xd61   : > { %5985 = vrcp.f32 %v3671_v10 }
 0xd69   : > { %v5984_v15 = vpop.eup %5983 }
 0xd6a   : > { %v3698_v19 = vmul.f32 %v5984_v15, %v5968_v34 }
 0xd6b   : > { %v5986_v17 = vpop.eup %5985 }
 0xd6c   : > { %v3699_v20 = vmul.f32 %v5986_v17, %v5970_v37 }
 0xd6e   : > { %v3706_v22 = vpack.c.bf16 %v3699_v20, %v3698_v19 }
 0xd70   : > { %5658 = vmatmul.mubr.msk.bf16.vlgmr.msra.gmra.mrb[84].mxu0 %vm1462_vm2, %v3706_v22 }
 0xd71   : > { %5668 = vmatpush3.bf16.msra.mxu0 %v3712_v35  ;;  %5669 = vmatprep.mubr.msk.bf16.mxu0 %vm6076_vm1, %v6075_v16 }
 0xd72   : > { %5679 = vmatprep.subr.bf16.mxu0 %v6075_v16 }
 0xd7e   : > { %v3674_v24 = vpop.xlane.xlu0 %3673 }
 0xd7f   : > { %5987 = vrcp.f32 %v3674_v24 }
 0xd80   : > { %v3677_v25 = vpop.xlane.xlu1 %3676 }
 0xd81   : > { %5989 = vrcp.f32 %v3677_v25 }
 0xd82   : > { %v3680_v26 = vpop.xlane.xlu0 %3679 }
 0xd83   : > { %5991 = vrcp.f32 %v3680_v26 }
 0xd84   : > { %v3683_v27 = vpop.xlane.xlu1 %3682 }
 0xd85   : > { %5993 = vrcp.f32 %v3683_v27 }
 0xd89   : > { %v5988_v28 = vpop.eup %5987 }
 0xd8a   : > { %v3700_v30 = vmul.f32 %v5988_v28, %v5972_v54  ;;  %v5890_v54 = vld [vmem:[%s7264_s5 + $0x38] sm:$0xff]  }
 0xd8b   : > { %v5990_v29 = vpop.eup %5989 }
 0xd8c   : > { %v3701_v31 = vmul.f32 %v5990_v29, %v5974_v8 }
 0xd8d   : > { %v5992_v58 = vpop.eup %5991 }
 0xd8e   : > { %v3686_v55 = vpop.xlane.xlu0 %3685  ;;  %v3707_v33 = vpack.c.bf16 %v3701_v31, %v3700_v30  ;;  %v3702_v32 = vmul.f32 %v5992_v58, %v5976_v60 }
 0xd8f   : > { %v5994_v35 = vpop.eup %5993  ;;  %5995 = vrcp.f32 %v3686_v55 }
 0xd90   : > { %v3703_v34 = vmul.f32 %v5994_v35, %v5978_v0  ;;  %5664 = vmatmul.mubr.msk.bf16.vlgmr.msra.gmra.mrb[84].mxu1 %vm1462_vm2, %v3707_v33  ;;  %v3689_v36 = vpop.xlane.xlu1 %3688  ;;  %v4968_v35 = vld [vmem:[%s7265_s6 + $0x1] ss:$0 sm:$0xff] }
 0xd91   : > { %5674 = vmatpush3.bf16.msra.mxu1 %v3713_v47  ;;  %5997 = vrcp.f32 %v3689_v36  ;;  %5675 = vmatprep.mubr.msk.bf16.mxu1 %vm6076_vm1, %v6075_v16 }
 0xd92   : > { %v3708_v37 = vpack.c.bf16 %v3703_v34, %v3702_v32  ;;  %5685 = vmatprep.subr.bf16.mxu1 %v6075_v16 }
 0xd94   : > { %5670 = vmatmul.mubr.msk.bf16.vlgmr.msra.gmra.mrb[88].mxu0 %vm1462_vm2, %v3708_v37 }
 0xd95   : > { %5681 = vmatprep.mubr.msk.bf16.mxu0 %vm6076_vm1, %v6075_v16  ;;  %5680 = vmatpush3.bf16.msra.mxu0 %v5887_v44 }
 0xd96   : > { %5691 = vmatprep.subr.bf16.mxu0 %v6075_v16 }
 0xd99   : > { %v5996_v38 = vpop.eup %5995 }
 0xd9a   : > { %v3704_v40 = vmul.f32 %v5996_v38, %v5980_v3 }
 0xd9b   : > { %v5998_v39 = vpop.eup %5997 }
 0xd9c   : > { %v3705_v41 = vmul.f32 %v5998_v39, %v5982_v5 }
 0xd9e   : > { %v3709_v42 = vpack.c.bf16 %v3705_v41, %v3704_v40 }
 0xda0   : > { %5676 = vmatmul.mubr.msk.bf16.vlgmr.msra.gmra.mrb[88].mxu1 %vm1462_vm2, %v3709_v42 }
 0xda1   : > { %5687 = vmatprep.mubr.msk.bf16.mxu1 %vm6076_vm1, %v6075_v16  ;;  %5686 = vmatpush3.bf16.msra.mxu1 %v5888_v46 }
 0xda2   : > { %5697 = vmatprep.subr.bf16.mxu1 %v6075_v16 }
 0xe43   : > { %v3751_v47 = vpop.f32.mrb[84].mxu0 }
 0xe44   : > { %v5659_v43 = vpop.f32.mrb[85].mxu0 }
 0xe45   : > { %v3754_v45 = vpop.f32.mrb[86].mxu0 }
 0xe46   : > { %v3890_v49 = vpack.c.bf16 %v3754_v45, %v3751_v47  ;;  %v5660_v50 = vpop.f32.mrb[87].mxu0 }
 0xe48   : > { %5682 = vmatmul.mubr.msk.bf16.vlgmr.msra.gmra.mrb[92].mxu0 %vm1462_vm2, %v3890_v49 }
 0xe49   : > { %5692 = vmatpush3.bf16.msra.mxu0 %v5889_v48  ;;  %5693 = vmatprep.mubr.msk.bf16.mxu0 %vm6076_vm1, %v6075_v16 }
 0xe63   : > { %v3795_v51 = vpop.f32.mrb[84].mxu1 }
 0xe64   : > { %v5665_v52 = vpop.f32.mrb[85].mxu1 }
 0xe65   : > { %v3798_v13 = vpop.f32.mrb[86].mxu1 }
 0xe66   : > { %v3891_v56 = vpack.c.bf16 %v3798_v13, %v3795_v51  ;;  %v5666_v57 = vpop.f32.mrb[87].mxu1 }
 0xe67   : > { %v3839_v8 = vpop.f32.mrb[88].mxu0  ;;  %v5896_v57 = vld [vmem:[%s7268_s9 + $0x54] ss:$8 sps:$4 sm:$0xff]  }
 0xe68   : > { %v5671_v12 = vpop.f32.mrb[89].mxu0  ;;  %5688 = vmatmul.mubr.msk.bf16.vlgmr.msra.gmra.mrb[92].mxu1 %vm1462_vm2, %v3891_v56  ;;  %v5891_v56 = vld [vmem:[%s7268_s9 + $0x40] ss:$8 sps:$4 sm:$0xff]  }
 0xe69   : > { %v3842_v14 = vpop.f32.mrb[90].mxu0  ;;  %5698 = vmatpush3.bf16.msra.mxu1 %v5890_v54  ;;  %5699 = vmatprep.mubr.msk.bf16.mxu1 %vm6076_vm1, %v6075_v16  ;;  %v5893_v54 = vld [vmem:[%s7268_s9 + $0x44] ss:$8 sps:$4 sm:$0xff]  }
 0xe6a   : > { %v3892_v59 = vpack.c.bf16 %v3842_v14, %v3839_v8  ;;  %v5672_v60 = vpop.f32.mrb[91].mxu0  ;;  %4241 = vmatprep.subr.bf16.mxu0 %v5893_v54  ;;  %v5894_v8 = vld [vmem:[%s7268_s9 + $0x50] ss:$8 sps:$4 sm:$0xff]   ;;  %v5899_v12 = vld [vmem:[%s7268_s9 + $0x64] ss:$8 sps:$4 sm:$0xff]  }
 0xe6b   : > { %v5897_v14 = vld [vmem:[%s7268_s9 + $0x60] ss:$8 sps:$4 sm:$0xff]   ;;  %v5902_v60 = vld [vmem:[%s7268_s9 + $0x74] ss:$8 sps:$4 sm:$0xff]  }
 0xe6c   : > { %5694 = vmatmul.mubr.msk.bf16.vlgmr.msra.gmra.mrb[96].mxu0 %vm1462_vm2, %v3892_v59  ;;  %v5900_v59 = vld [vmem:[%s7268_s9 + $0x70] ss:$8 sps:$4 sm:$0xff]  }
 0xe6d   : > { %4273 = vmatprep.mubr.bf16.mxu0 %v6077_v18  ;;  %4242 = vmatpush1.bf16.msra.mxu0 %v5891_v56 }
 0xe6e   : > { %4243 = vmatprep.subr.bf16.mxu0 %v5896_v57 }
 0xe71   : > { %4244 = vmatpush1.bf16.msra.mxu0 %v5894_v8 }
 0xe72   : > { %4245 = vmatprep.subr.bf16.mxu0 %v5899_v12 }
 0xe73   : > { %v3883_v61 = vpop.f32.mrb[88].mxu1 }
 0xe74   : > { %v5677_v62 = vpop.f32.mrb[89].mxu1 }
 0xe75   : > { %v3886_v63 = vpop.f32.mrb[90].mxu1  ;;  %4246 = vmatpush1.bf16.msra.mxu0 %v5897_v14  ;;  %v5904_v62 = vld [vmem:[%s7270_s11 + $0x80] sm:$0xff]  }
 0xe76   : > { %v3893_v0 = vpack.c.bf16 %v3886_v63, %v3883_v61  ;;  %v5678_v1 = vpop.f32.mrb[91].mxu1  ;;  %4247 = vmatprep.subr.bf16.mxu0 %v5902_v60  ;;  %v5903_v61 = vld [vmem:[%s7270_s11 + $0xc0] sm:$0xff]   ;;  %v5905_v63 = vld [vmem:[%s7270_s11 + $0xc8] sm:$0xff]  }
 0xe77   : > { %5244 = vmatprep.subr.bf16.mxu1 %v5903_v61  ;;  %v5907_v1 = vld [vmem:[%s7270_s11 + $0xd0] sm:$0xff]  }
 0xe78   : > { %5700 = vmatmul.mubr.msk.bf16.vlgmr.msra.gmra.mrb[96].mxu1 %vm1462_vm2, %v3893_v0  ;;  %v5906_v0 = vld [vmem:[%s7270_s11 + $0x88] sm:$0xff]  }
 0xe79   : > { %4248 = vmatpush1.bf16.msra.mxu0 %v5900_v59  ;;  %5245 = vmatpush3.bf16.msra.mxu1 %v5904_v62 }
 0xe7a   : > { %5703 = vmatprep.subr.bf16.mxu0 %v6075_v16  ;;  %5246 = vmatprep.subr.bf16.mxu1 %v5905_v63 }
 0xe7d   : > { %5247 = vmatpush3.bf16.msra.mxu1 %v5906_v0 }
 0xe7e   : > { %5248 = vmatprep.subr.bf16.mxu1 %v5907_v1 }
 0xf1b   : > { %v3946_v2 = vpop.f32.mrb[92].mxu0 }
 0xf1c   : > { %v5683_v3 = vpop.f32.mrb[93].mxu0  ;;  %v4103_v9 = vsel %vm530_vm0, %v3946_v2, 0.0  ;;  %v5908_v2 = vld [vmem:[%s7270_s11 + $0x90] sm:$0xff]  }
 0xf1d   : > { %v3949_v4 = vpop.f32.mrb[94].mxu0  ;;  %v5909_v3 = vld [vmem:[%s7270_s11 + $0xd8] sm:$0xff]   ;;  %5249 = vmatpush3.bf16.msra.mxu1 %v5908_v2 }
 0xf1e   : > { %v5684_v5 = vpop.f32.mrb[95].mxu0  ;;  %v4110_v18 = vsel %vm530_vm0, %v3949_v4, 0.0  ;;  %v5910_v4 = vld [vmem:[%s7270_s11 + $0x98] sm:$0xff]   ;;  %5250 = vmatprep.subr.bf16.mxu1 %v5909_v3 }
 0xf1f   : > { %v5911_v5 = vld [vmem:[%s7270_s11 + $0xe0] sm:$0xff]  }
 0xf21   : > { %5251 = vmatpush3.bf16.msra.mxu1 %v5910_v4 }
 0xf22   : > { %5252 = vmatprep.subr.bf16.mxu1 %v5911_v5 }
 0xf3b   : > { %v3996_v6 = vpop.f32.mrb[92].mxu1 }
 0xf3c   : > { %v4104_v10 = vsel %vm530_vm0, %v3996_v6, 0.0  ;;  %v5689_v15 = vpop.f32.mrb[93].mxu1  ;;  %v5912_v6 = vld [vmem:[%s7270_s11 + $0xa0] sm:$0xff]  }
 0xf3d   : > { %v4105_v17 = vadd.f32 %v4104_v10, %v4103_v9  ;;  %v3999_v19 = vpop.f32.mrb[94].mxu1  ;;  %v5913_v9 = vld [vmem:[%s7270_s11 + $0xe8] sm:$0xff]   ;;  %5253 = vmatpush3.bf16.msra.mxu1 %v5912_v6 }
 0xf3e   : > { %v4111_v20 = vsel %vm530_vm0, %v3999_v19, 0.0  ;;  %v5690_v22 = vpop.f32.mrb[95].mxu1  ;;  %5254 = vmatprep.subr.bf16.mxu1 %v5913_v9 }
 0xf3f   : > { %v4112_v24 = vadd.f32 %v4111_v20, %v4110_v18  ;;  %v4046_v25 = vpop.f32.mrb[96].mxu0 }
 0xf40   : > { %v4106_v26 = vsel %vm530_vm0, %v4046_v25, 0.0  ;;  %v5695_v27 = vpop.f32.mrb[97].mxu0 }
 0xf41   : > { %v4107_v28 = vadd.f32 %v4106_v26, %v4105_v17  ;;  %v4049_v29 = vpop.f32.mrb[98].mxu0 }
 0xf42   : > { %v4113_v30 = vsel %vm530_vm0, %v4049_v29, 0.0  ;;  %v5696_v31 = vpop.f32.mrb[99].mxu0  ;;  %v4972_v29 = vld [vmem:[%s7267_s8 + $0x1] ss:$0 sm:$0xff] }
 0xf43   : > { %v4114_v58 = vadd.f32 %v4113_v30, %v4112_v24  ;;  %v4971_v24 = vld [vmem:[%s7266_s7 + $0x1] ss:$0 sm:$0xff] }
 0xf4b   : > { %v4096_v55 = vpop.f32.mrb[96].mxu1 }
 0xf4c   : > { %v4108_v33 = vsel %vm530_vm0, %v4096_v55, 0.0  ;;  %v5701_v32 = vpop.f32.mrb[97].mxu1 }
 0xf4d   : > { %v4109_v34 = vadd.f32 %v4108_v33, %v4107_v28  ;;  %v4099_v36 = vpop.f32.mrb[98].mxu1  ;;  %v5914_v33 = vld [vmem:[%s7270_s11 + $0xa8] sm:$0xff]   ;;  %v5916_v32 = vld [vmem:[%s7270_s11 + $0xb0] sm:$0xff]  }
 0xf4e   : > { %v4115_v37 = vsel %vm530_vm0, %v4099_v36, 0.0  ;;  %v5702_v38 = vpop.f32.mrb[99].mxu1  ;;  %5255 = vmatpush3.bf16.msra.mxu1 %v5914_v33  ;;  %v5918_v36 = vld [vmem:[%s7270_s11 + $0xb8] sm:$0xff]  }
 0xf4f   : > { %v4125_v39 = vadd.f32 %v4968_v35, %v4109_v34  ;;  %v4116_v40 = vadd.f32 %v4115_v37, %v4114_v58  ;;  %v5917_v34 = vld [vmem:[%s7270_s11 + $0xf8] sm:$0xff]   ;;  %v4981_v37 = vld [vmem:[%s7269_s10 + $0x2] sm:$0x3] }
 0xf50   : > { %v4191_v38 = vrot.slane %v4981_v37, %v2217_v11 }
 0xf51   : > { %v4126_v41 = vadd.f32 %v4968_v35, %v4116_v40  ;;  %v7076_v42 = vadd.f32 %v4125_v39, %v6704_v21  ;;  %v5915_v35 = vld [vmem:[%s7270_s11 + $0xf0] sm:$0xff]   ;;  %v4195_v39 = vrot.slane %v4981_v37, %v2221_v53 }
 0xf52   : > { %5256 = vmatprep.subr.bf16.mxu1 %v5915_v35 }
 0xf53   : > { %v4133_v44 = vsel %vm530_vm0, %v7076_v42, 0.0  ;;  %v7081_v46 = vadd.f32 %v4126_v41, %v6707_v23  ;;  %5257 = vmatpush3.bf16.msra.mxu1 %v5916_v32 }
 0xf54   : > { %4134 = vadd.xlane.f32.xlu0 %v4133_v44  ;;  %5258 = vmatprep.subr.bf16.mxu1 %v5917_v34 }
 0xf55   : > { %v4136_v47 = vsel %vm530_vm0, %v7081_v46, 0.0 }
 0xf56   : > { %4137 = vadd.xlane.f32.xlu1 %v4136_v47 }
 0xf57   : > { %5259 = vmatpush3.bf16.msra.mxu1 %v5918_v36 }
 0xfe1   : > { %v4135_v43 = vpop.xlane.xlu0 %4134 }
 0xfe2   : > { %v4139_v45 = vmul.f32 0.015625, %v4135_v43 }
 0xfe3   : > { %v4138_v48 = vpop.xlane.xlu1 %4137 }
 0xfe4   : > { %v4141_v49 = vsub.f32 %v7076_v42, %v4139_v45  ;;  %v4140_v50 = vmul.f32 0.015625, %v4138_v48 }
 0xfe6   : > { %v4142_v21 = vsub.f32 %v7081_v46, %v4140_v50  ;;  %v4143_v51 = vmul.f32 %v4141_v49, %v4141_v49 }
 0xfe8   : > { %v4145_v52 = vsel %vm530_vm0, %v4143_v51, 0.0  ;;  %v4144_v13 = vmul.f32 %v4142_v21, %v4142_v21 }
 0xfe9   : > { %4146 = vadd.xlane.f32.xlu0 %v4145_v52 }
 0xfea   : > { %v4148_v23 = vsel %vm530_vm0, %v4144_v13, 0.0 }
 0xfeb   : > { %4149 = vadd.xlane.f32.xlu1 %v4148_v23 }
0x1076   : > { %v4147_v10 = vpop.xlane.xlu0 %4146 }
0x1077   : > { %v4151_v15 = vmul.f32 0.015625, %v4147_v10  ;;  %v5920_v10 = vld [vmem:[%s7274_s15 + $0x8] sm:$0xff]  }
0x1078   : > { %v4150_v17 = vpop.xlane.xlu1 %4149 }
0x1079   : > { %v4153_v19 = vadd.f32 1e-05, %v4151_v15  ;;  %v4152_v18 = vmul.f32 0.015625, %v4150_v17  ;;  %v5921_v15 = vld [vmem:[%s7274_s15 + $0x10] sm:$0xff]   ;;  %v5922_v17 = vld [vmem:[%s7274_s15 + $0x18] sm:$0xff]  }
0x107b   : > { %5999 = vrsqrt.f32 %v4153_v19  ;;  %v4154_v20 = vadd.f32 1e-05, %v4152_v18 }
0x107d   : > { %6001 = vrsqrt.f32 %v4154_v20 }
0x1085   : > { %v6000_v22 = vpop.eup %5999 }
0x1086   : > { %v4157_v25 = vmul.f32 %v6000_v22, %v4141_v49 }
0x1087   : > { %v6002_v26 = vpop.eup %6001 }
0x1088   : > { %v4165_v27 = vmul.f32 %v4971_v24, %v4157_v25  ;;  %v4158_v28 = vmul.f32 %v6002_v26, %v4142_v21 }
0x108a   : > { %v4166_v30 = vmul.f32 %v4971_v24, %v4158_v28  ;;  %v4173_v31 = vadd.f32 %v4972_v29, %v4165_v27  ;;  %v5041_v27 = vld [vmem:[%s7272_s13] ss:$0 sm:$0xff] }
0x108c   : > { %v4174_v58 = vadd.f32 %v4972_v29, %v4166_v30 }
0x108e   : > { %v4175_v55 = vpack.c.bf16 %v4174_v58, %v4173_v31  ;;  %v5042_v31 = vld [vmem:[%s7273_s14] ss:$0 sm:$0xff] }
0x1090   : > { %4990 = vmatmul.mubr.msk.bf16.vlgmr.msra.gmra.mrb[100].mxu0 %vm530_vm0, %v4175_v55 }
0x1091   : > { %5711 = vmatprep.mubr.msk.bf16.mxu0 %vm6076_vm1, %v6075_v16 }
0x1163   : > { %v4275_v40 = vpop.f32.mrb[100].mxu0 }
0x1164   : > { %v4276_v41 = vadd.f32 %v4275_v40, %v4191_v38  ;;  %v4277_v44 = vpop.f32.mrb[101].mxu0 }
0x1165   : > { %v4278_v47 = vadd.f32 %v4277_v44, %v4195_v39  ;;  %v4279_v43 = vpop.f32.mrb[102].mxu0 }
0x1166   : > { %v4280_v45 = vadd.f32 %v4279_v43, %v4191_v38  ;;  %v4281_v48 = vpop.f32.mrb[103].mxu0  ;;  %v4284_v50 = vmax.f32 %v4276_v41, 0.0 }
0x1167   : > { %v4282_v49 = vadd.f32 %v4281_v48, %v4195_v39  ;;  %v4285_v51 = vmax.f32 %v4278_v47, 0.0 }
0x1168   : > { %v4286_v21 = vmax.f32 %v4280_v45, 0.0 }
0x1169   : > { %v4287_v52 = vmax.f32 %v4282_v49, 0.0 }
0x116a   : > { %v4288_v13 = vpack.c.bf16 %v4286_v21, %v4284_v50 }
0x116b   : > { %v4289_v23 = vpack.c.bf16 %v4287_v52, %v4285_v51 }
0x116d   : > { %4459 = vmatprep.mubr.bf16.mxu1 %v4289_v23 }
0x116e   : > { %4460 = vmatmul.mubr.bf16.vlgmr.msra.gmra.mrb[100].mxu1 %v4288_v13 }
0x1241   : > { %v5260_v11 = vpop.f32.mrb[100].mxu1 }
0x1242   : > { %v5261_v53 = vpop.f32.mrb[101].mxu1 }
0x1243   : > { %v5262_v54 = vadd.f32 %v5261_v53, %v5260_v11  ;;  %v5263_v56 = vpop.f32.mrb[102].mxu1 }
0x1244   : > { %v5264_v57 = vpop.f32.mrb[103].mxu1 }
0x1245   : > { %v4462_v8 = vadd.f32 %v5262_v54, %v5024_v7  ;;  %v5265_v12 = vadd.f32 %v5264_v57, %v5263_v56 }
0x1247   : > { %v4465_v14 = vadd.f32 %v5265_v12, %v5024_v7  ;;  %v4468_v59 = vadd.f32 %v4462_v8, %v7076_v42 }
0x1249   : > { %v4472_v60 = vsel %vm530_vm0, %v4468_v59, 0.0  ;;  %v4469_v61 = vadd.f32 %v4465_v14, %v7081_v46  ;;  %v5919_v46 = vld [vmem:[%s7274_s15] sm:$0xff]  }
0x124a   : > { %4473 = vadd.xlane.f32.xlu0 %v4472_v60  ;;  %5704 = vmatpush3.bf16.msra.mxu0 %v5919_v46 }
0x124b   : > { %v4475_v62 = vsel %vm530_vm0, %v4469_v61, 0.0  ;;  %5705 = vmatprep.subr.bf16.mxu0 %v6075_v16 }
0x124c   : > { %4476 = vadd.xlane.f32.xlu1 %v4475_v62 }
0x124e   : > { %5706 = vmatpush3.bf16.msra.mxu0 %v5920_v10 }
0x124f   : > { %5707 = vmatprep.subr.bf16.mxu0 %v6075_v16 }
0x1252   : > { %5708 = vmatpush3.bf16.msra.mxu0 %v5921_v15 }
0x1253   : > { %5709 = vmatprep.subr.bf16.mxu0 %v6075_v16 }
0x1256   : > { %5710 = vmatpush3.bf16.msra.mxu0 %v5922_v17 }
0x12d7   : > { %v4474_v63 = vpop.xlane.xlu0 %4473 }
0x12d8   : > { %v4478_v0 = vmul.f32 0.015625, %v4474_v63 }
0x12d9   : > { %v4477_v1 = vpop.xlane.xlu1 %4476 }
0x12da   : > { %v4480_v2 = vsub.f32 %v4468_v59, %v4478_v0  ;;  %v4479_v3 = vmul.f32 0.015625, %v4477_v1 }
0x12dc   : > { %v4481_v4 = vsub.f32 %v4469_v61, %v4479_v3  ;;  %v4482_v5 = vmul.f32 %v4480_v2, %v4480_v2 }
0x12de   : > { %v4484_v6 = vsel %vm530_vm0, %v4482_v5, 0.0  ;;  %v4483_v9 = vmul.f32 %v4481_v4, %v4481_v4 }
0x12df   : > { %4485 = vadd.xlane.f32.xlu0 %v4484_v6 }
0x12e0   : > { %v4487_v42 = vsel %vm530_vm0, %v4483_v9, 0.0 }
0x12e1   : > { %4488 = vadd.xlane.f32.xlu1 %v4487_v42 }
0x136c   : > { %v4486_v19 = vpop.xlane.xlu0 %4485 }
0x136d   : > { %v4490_v18 = vmul.f32 0.015625, %v4486_v19 }
0x136e   : > { %v4489_v20 = vpop.xlane.xlu1 %4488 }
0x136f   : > { %v4492_v22 = vadd.f32 1e-05, %v4490_v18  ;;  %v4491_v24 = vmul.f32 0.015625, %v4489_v20 }
0x1371   : > { %6003 = vrsqrt.f32 %v4492_v22  ;;  %v4493_v25 = vadd.f32 1e-05, %v4491_v24 }
0x1373   : > { %6005 = vrsqrt.f32 %v4493_v25 }
0x137b   : > { %v6004_v26 = vpop.eup %6003 }
0x137c   : > { %v4496_v28 = vmul.f32 %v6004_v26, %v4480_v2 }
0x137d   : > { %v6006_v29 = vpop.eup %6005 }
0x137e   : > { %v4504_v30 = vmul.f32 %v5041_v27, %v4496_v28  ;;  %v4497_v16 = vmul.f32 %v6006_v29, %v4481_v4 }
0x1380   : > { %v4505_v58 = vmul.f32 %v5041_v27, %v4497_v16  ;;  %v4512_v55 = vadd.f32 %v5042_v31, %v4504_v30 }
0x1382   : > { %v4513_v33 = vadd.f32 %v5042_v31, %v4505_v58 }
0x1384   : > { %v4514_v35 = vpack.c.bf16 %v4513_v33, %v4512_v55 }
0x1386   : > { %5712 = vmatmul.mubr.msk.bf16.vlgmr.msra.gmra.mrb[104].mxu0 %vm530_vm0, %v4514_v35 }
0x1459   : > { %v4584_v32 = vpop.f32.mrb[104].mxu0 }
0x145a   : > { %4591 = vst [vmem:[%s515_s29] sm:$0xff] %v4584_v32  ;;  %v5713_v34 = vpop.f32.mrb[105].mxu0 }
0x145b   : > { %v4587_v36 = vpop.f32.mrb[106].mxu0 }
0x145c   : > { %4592 = vst [vmem:[%s515_s29 + $0x8] sm:$0xff] %v4587_v36  ;;  %v5714_v37 = vpop.f32.mrb[107].mxu0 }
0x145d   : > { %6024 = shalt.err (!%p6021_p3)
}
0x145e   : > { %s6025_s23 = scalar_lea.hbm %s7216_s18, 256  ;;  %s6029_s30 = scalar_lea.hbm %s7275_s16, 512 }
0x145f   : > { %p6026_p4 = scmp.ne.s32.totalorder %s7216_s18, %s6025_s23  ;;  %p6030_p9 = scmp.lt.u32.totalorder %s7216_s18, %s7275_s16 }
0x1460   : > { %p6031_p10 = scmp.lt.u32.totalorder %s6029_s30, %s6025_s23  ;;  %p6033_p12 = scmp.lt.u32.totalorder %s6025_s23, %s7216_s18 }
0x1461   : > { %p6027_p7 = pnand %p6026_p4, %p6204_p5 }
0x1462   : > { %p6032_p11 = por %p6031_p10, %p6030_p9 }
0x1463   : > { %p6028_p8 = pneg %p6027_p7 }
0x1464   : > { %p6034_p13 = por %p6033_p12, %p6032_p11 }
0x1466   : > { %p6035_p0 = pnand %p6034_p13, %p6028_p8 }
0x1468   : > { %6038 = shalt.err (!%p6035_p0)
}
0x1469   : > { %s6079_s1 = smov 128   ;;  %s6080_s19 = smov 8  }
0x146a   : > { %5715 = dma.vmem_to_hbm [thread:$0]  (%p6204_p5), %s7211_s20, 256, %s7216_s18, %s7218_s17, %s6079_s1, %s6079_s1, %s6080_s19  }
0x146b PF: > { %p5721_p1 = scmp.ge.s32.totalorder %s6073_s24, 2  ;;  %s4622_s29 = sand.u32 1, %s6061_s21  }
0x146c   : > { %s4623_s23 = scalar_lea.sflag [#allocation3], %s4622_s29 }
0x146d   : > { %p5718_p2 = pnand %p5721_p1, %p6208_p6 }
0x146f   : > { %6056 = dma.done.wait (!%p5718_p2), %s4623_s23, 256  }
0x1470   : > { %6058 = vsyncadd (!%p5718_p2), %s4623_s23, 4294967040  ;;  %s7291_s24 = sld [smem:[#allocation6_spill]]  ;;  %s7292_s26 = sld [smem:[#allocation5_spill]] }
0x1471   : > { %s7293_s23 = sld [smem:[#allocation7_spill]]  ;;  %s7294_s21 = smov %s6065_s22 }
0x1476   : > { %p26_p3 = scmp.ge.s32.totalorder %s7291_s24, 4   ;;  %s7295_s22 = smov %s7292_s26 }
0x1478   :  { %28 = sbr.rel (!%p26_p3) target bundleno = 6 (0x6), region = 130 }
0x147f   :  { %4628 = vsyncpa [#allocation3], 1 }
0x1480   :  { %4630 = vsyncpa [#allocation3 + $0x1], 1 }

</bundles_post_ra>
